<compile_context>
chip_gen: v7x
topology: tpu7x:2x2x1
jax: 0.10.0
libtpu: 0.0.40
codegen_flags: <defaults>
</compile_context>

<pallas_src>
import functools
import numpy as np

import jax
import jax.numpy as jnp
from jax import lax
from jax.experimental import pallas as pl
from jax.experimental.pallas import tpu as pltpu

EPS = 1e-5                      # nn.BatchNorm2d default
LANE = 128                      # lane width / channel padding target
VMEM_LIMIT = 32 * 1024 * 1024   # explicit scoped-VMEM budget (fits v5e/v6e/v7x)


def _round_up(x, m):
    return (x + m - 1) // m * m


# ----------------------------- Pallas kernels ------------------------------ #

def _conv_stats_kernel(*refs, n_conv, tm, m_real, need_mask):
    """Per M-tile, for each of n_conv convs: y = patches @ w + bias (MXU, bf16
    operands, f32 accumulation); write y and accumulate per-channel
    (sum, sum-of-squares) into a resident (2, C) output block."""
    i = pl.program_id(0)
    in_refs = refs[:3 * n_conv]
    y_refs = refs[3 * n_conv:4 * n_conv]
    st_refs = refs[4 * n_conv:5 * n_conv]

    if need_mask:
        cp = y_refs[0].shape[1]
        rows = i * tm + lax.broadcasted_iota(jnp.int32, (tm, cp), 0)
        valid = rows < m_real

    for c in range(n_conv):
        p_ref, w_ref, b_ref = in_refs[3 * c:3 * c + 3]
        y = jnp.dot(p_ref[...], w_ref[...], preferred_element_type=jnp.float32)
        y = y + b_ref[...]
        y_refs[c][...] = y

        ym = jnp.where(valid, y, 0.0) if need_mask else y
        contrib = jnp.concatenate(
            [jnp.sum(ym, axis=0, keepdims=True),
             jnp.sum(ym * ym, axis=0, keepdims=True)], axis=0)
        st = st_refs[c]

        @pl.when(i == 0)
        def _init(st=st, v=contrib):
            st[...] = v

        @pl.when(i > 0)
        def _accum(st=st, v=contrib):
            st[...] = st[...] + v


def _bn_apply_kernel(*refs, has_res, relu):
    """out = y*scale + shift [+ res*rscale + rshift] [ReLU], per M-tile."""
    if has_res:
        y_ref, sc_ref, sh_ref, r_ref, rsc_ref, rsh_ref, o_ref = refs
        out = (y_ref[...] * sc_ref[...] + sh_ref[...]
               + r_ref[...] * rsc_ref[...] + rsh_ref[...])
    else:
        y_ref, sc_ref, sh_ref, o_ref = refs
        out = y_ref[...] * sc_ref[...] + sh_ref[...]
    if relu:
        out = jnp.maximum(out, 0.0)
    o_ref[...] = out


# --------------------------- pallas_call wrappers --------------------------- #

def conv_stats(convs, tm, m_real):
    """convs: list of (patches (Mp,K) bf16, w (K,CP) bf16, bias (1,CP) f32).
    Returns ([y_i (Mp,CP) f32], [stats_i (2,CP) f32 = (sum, sumsq)])."""
    n = len(convs)
    mp = convs[0][0].shape[0]
    cp = convs[0][1].shape[1]
    nt = mp // tm

    args, in_specs = [], []
    for (p, w, b) in convs:
        k = p.shape[1]
        args += [p, w, b]
        in_specs += [
            pl.BlockSpec((tm, k), lambda i: (i, 0)),   # patch tile (pipelined)
            pl.BlockSpec((k, cp), lambda i: (0, 0)),   # resident weights
            pl.BlockSpec((1, cp), lambda i: (0, 0)),   # resident bias
        ]
    out_shape = tuple([jax.ShapeDtypeStruct((mp, cp), jnp.float32)] * n
                      + [jax.ShapeDtypeStruct((2, cp), jnp.float32)] * n)
    out_specs = tuple([pl.BlockSpec((tm, cp), lambda i: (i, 0))] * n
                      + [pl.BlockSpec((2, cp), lambda i: (0, 0))] * n)

    kern = functools.partial(_conv_stats_kernel, n_conv=n, tm=tm,
                             m_real=m_real, need_mask=(mp > m_real))
    outs = pl.pallas_call(
        kern,
        out_shape=out_shape,
        grid=(nt,),
        in_specs=in_specs,
        out_specs=out_specs,
        compiler_params=pltpu.CompilerParams(
            dimension_semantics=("arbitrary",),   # stats block is revisited
            vmem_limit_bytes=VMEM_LIMIT),
    )(*args)
    return list(outs[:n]), list(outs[n:])


def bn_apply(y, scale, shift, *, relu, tm, res=None, rscale=None, rshift=None):
    mp, cp = y.shape
    nt = mp // tm
    has_res = res is not None
    args = [y, scale, shift]
    in_specs = [pl.BlockSpec((tm, cp), lambda i: (i, 0)),
                pl.BlockSpec((1, cp), lambda i: (0, 0)),
                pl.BlockSpec((1, cp), lambda i: (0, 0))]
    if has_res:
        args += [res, rscale, rshift]
        in_specs += [pl.BlockSpec((tm, cp), lambda i: (i, 0)),
                     pl.BlockSpec((1, cp), lambda i: (0, 0)),
                     pl.BlockSpec((1, cp), lambda i: (0, 0))]
    kern = functools.partial(_bn_apply_kernel, has_res=has_res, relu=relu)
    return pl.pallas_call(
        kern,
        out_shape=jax.ShapeDtypeStruct((mp, cp), jnp.float32),
        grid=(nt,),
        in_specs=in_specs,
        out_specs=pl.BlockSpec((tm, cp), lambda i: (i, 0)),
        compiler_params=pltpu.CompilerParams(
            dimension_semantics=("parallel",),    # elementwise; megacore-shardable
            vmem_limit_bytes=VMEM_LIMIT),
    )(*args)


# ------------------------------ JAX glue ----------------------------------- #

def _im2col_3x3(x_nhwc, stride):
    """3x3 patches with padding=1; patch order = (ky, kx, cin)."""
    N, H, W, C = x_nhwc.shape
    Ho = (H - 1) // stride + 1
    Wo = (W - 1) // stride + 1
    xp = jnp.pad(x_nhwc, ((0, 0), (1, 1), (1, 1), (0, 0)))
    cols = []
    for ky in range(3):
        for kx in range(3):
            cols.append(xp[:, ky:ky + stride * Ho:stride,
                           kx:kx + stride * Wo:stride, :])
    patches = jnp.concatenate(cols, axis=-1)            # (N, Ho, Wo, 9*C)
    return patches.reshape(N * Ho * Wo, 9 * C), Ho, Wo


def _w_to_mat(w):
    """(Cout, Cin, kh, kw) -> (kh*kw*Cin, Cout), matching (ky, kx, cin) order."""
    co, ci, kh, kw = w.shape
    return jnp.transpose(w, (2, 3, 1, 0)).reshape(kh * kw * ci, co)


def _prep_conv(patches, w, b, mp, cp):
    """Pad rows / output lanes, cast matmul operands to bf16 (bias stays f32)."""
    m = patches.shape[0]
    p = jnp.pad(patches, ((0, mp - m), (0, 0))).astype(jnp.bfloat16)
    wm = jnp.pad(_w_to_mat(w), ((0, 0), (0, cp - w.shape[0]))).astype(jnp.bfloat16)
    bm = jnp.pad(b, (0, cp - b.shape[0]))[None, :].astype(jnp.float32)
    return p, wm, bm


def _bn_affine(stats, gamma, beta, m_real, cp):
    """Fold batch stats (sum, sumsq) + (gamma, beta) into per-channel scale/shift."""
    g = jnp.pad(gamma, (0, cp - gamma.shape[0]))[None, :].astype(jnp.float32)
    bt = jnp.pad(beta, (0, cp - beta.shape[0]))[None, :].astype(jnp.float32)
    mean = stats[0:1, :] / m_real
    var = jnp.maximum(stats[1:2, :] / m_real - mean * mean, 0.0)
    scale = g * lax.rsqrt(var + EPS)
    shift = bt - mean * scale
    return scale, shift


def res_encoder_block(x_nchw, params, stride, tm=None):
    """Pallas implementation of resEncoderBlock.forward (training-mode BN)."""
    N, Cin, H, W = x_nchw.shape
    Cout = params["w1"].shape[0]
    if stride == 1 and Cin != Cout:
        raise ValueError("identity residual requires Cin == Cout (as in PyTorch)")
    cp = _round_up(Cout, LANE)
    x = jnp.transpose(x_nchw, (0, 2, 3, 1)).astype(jnp.float32)      # NHWC

    # conv1 (3x3, stride) + bn1 + relu
    p1, Ho, Wo = _im2col_3x3(x, stride)
    M = N * Ho * Wo
    if tm is None:
        tm = min(256, _round_up(M, LANE))   # real workloads: bump to 512-2048 rows
    mp = _round_up(M, tm)
    c1 = _prep_conv(p1, params["w1"], params["b1"], mp, cp)
    (y1,), (st1,) = conv_stats([c1], tm, M)
    sc1, sh1 = _bn_affine(st1, params["g1"], params["bt1"], M, cp)
    a1 = bn_apply(y1, sc1, sh1, relu=True, tm=tm)

    # conv2 (3x3, stride 1) + bn2 -- stats pass fused with the downsample conv
    h1 = a1[:M, :Cout].reshape(N, Ho, Wo, Cout)
    p2, _, _ = _im2col_3x3(h1, 1)
    c2 = _prep_conv(p2, params["w2"], params["b2"], mp, cp)

    if stride != 1:
        pd = x[:, ::stride, ::stride, :].reshape(M, Cin)
        cd = _prep_conv(pd, params["wd"], params["bd"], mp, cp)
        (y2, yd), (st2, std) = conv_stats([c2, cd], tm, M)
        rscale, rshift = _bn_affine(std, params["gd"], params["btd"], M, cp)
        res = yd                                   # BN affine applied in-kernel
    else:
        (y2,), (st2,) = conv_stats([c2], tm, M)
        res = jnp.pad(x.reshape(M, Cin), ((0, mp - M), (0, cp - Cin)))
        rscale = jnp.ones((1, cp), jnp.float32)
        rshift = jnp.zeros((1, cp), jnp.float32)

    sc2, sh2 = _bn_affine(st2, params["g2"], params["bt2"], M, cp)
    out = bn_apply(y2, sc2, sh2, relu=True, tm=tm,
                   res=res, rscale=rscale, rshift=rshift)
    out = out[:M, :Cout].reshape(N, Ho, Wo, Cout)
    return jnp.transpose(out, (0, 3, 1, 2))        # back to NCHW


# -------------------------- deterministic params --------------------------- #

def init_params(key, in_ch, out_ch, stride):
    ks = jax.random.split(key, 12)

    def conv_w(k, co, ci, kh, kw):
        bound = 1.0 / np.sqrt(ci * kh * kw)
        return jax.random.uniform(k, (co, ci, kh, kw), jnp.float32, -bound, bound)

    def vec(k, n, lo=-0.5, hi=0.5):
        return jax.random.uniform(k, (n,), jnp.float32, lo, hi)

    p = {
        "w1": conv_w(ks[0], out_ch, in_ch, 3, 3), "b1": vec(ks[1], out_ch),
        "g1": 1.0 + vec(ks[2], out_ch), "bt1": vec(ks[3], out_ch),
        "w2": conv_w(ks[4], out_ch, out_ch, 3, 3), "b2": vec(ks[5], out_ch),
        "g2": 1.0 + vec(ks[6], out_ch), "bt2": vec(ks[7], out_ch),
    }
    if stride != 1:
        p.update({
            "wd": conv_w(ks[8], out_ch, in_ch, 1, 1), "bd": vec(ks[9], out_ch),
            "gd": 1.0 + vec(ks[10], out_ch), "btd": vec(ks[11], out_ch),
        })
    return p


# ------------------------- pure-JAX reference check ------------------------ #
# The reference uses bf16 conv operands with f32 accumulation to mirror the
# kernel's (intentional) bf16 MXU operands; BN/ReLU/residual math is f32.

def _bn_train(x, gamma, beta):
    mean = jnp.mean(x, axis=(0, 1, 2), keepdims=True)
    var = jnp.mean((x - mean) ** 2, axis=(0, 1, 2), keepdims=True)
    return (x - mean) * lax.rsqrt(var + EPS) * gamma + beta


def ref_block(x_nchw, params, stride):
    x = jnp.transpose(x_nchw, (0, 2, 3, 1)).astype(jnp.float32)

    def conv(h, w, b, s, pad):
        w_hwio = jnp.transpose(w, (2, 3, 1, 0)).astype(jnp.bfloat16)
        y = lax.conv_general_dilated(h.astype(jnp.bfloat16), w_hwio, (s, s),
                                     [(pad, pad), (pad, pad)],
                                     dimension_numbers=("NHWC", "HWIO", "NHWC"),
                                     preferred_element_type=jnp.float32)
        return y + b

    o = jax.nn.relu(_bn_train(conv(x, params["w1"], params["b1"], stride, 1),
                              params["g1"], params["bt1"]))
    o = _bn_train(conv(o, params["w2"], params["b2"], 1, 1),
                  params["g2"], params["bt2"])
    if stride != 1:
        r = _bn_train(conv(x, params["wd"], params["bd"], stride, 0),
                      params["gd"], params["btd"])
    else:
        r = x
    return jnp.transpose(jax.nn.relu(o + r), (0, 3, 1, 2))


# ---------------------------------- main ----------------------------------- #

if __name__ == "__main__":
    key = jax.random.PRNGKey(0)
    kx, kp1, kp2, kx3, kp3 = jax.random.split(key, 5)

    block_fn = jax.jit(res_encoder_block, static_argnames=("stride", "tm"))
    RTOL, ATOL = 5e-3, 5e-3   # bf16 matmul operands -> small rounding differences

    # Case 1: stride=2 (downsample branch), 4 -> 8 channels, 16x16 -> 8x8
    x1 = jax.random.normal(kx, (2, 4, 16, 16), dtype=jnp.float32)
    params1 = init_params(kp1, 4, 8, stride=2)
    y1 = jax.block_until_ready(block_fn(x1, params1, stride=2))
    assert y1.shape == (2, 8, 8, 8)
    np.testing.assert_allclose(np.asarray(y1), np.asarray(ref_block(x1, params1, 2)),
                               rtol=RTOL, atol=ATOL)

    # Case 2: stride=1 (identity residual), 4 -> 4 channels, 16x16
    #         M = 512 -> multi-tile grid, exercises the tiled BN accumulator.
    params2 = init_params(kp2, 4, 4, stride=1)
    y2 = jax.block_until_ready(block_fn(x1, params2, stride=1))
    assert y2.shape == (2, 4, 16, 16)
    np.testing.assert_allclose(np.asarray(y2), np.asarray(ref_block(x1, params2, 1)),
                               rtol=RTOL, atol=ATOL)

    # Case 3: odd spatial size (row masking path), 3 -> 8 channels, 10x10 -> 5x5
    x3 = jax.random.normal(kx3, (1, 3, 10, 10), dtype=jnp.float32)
    params3 = init_params(kp3, 3, 8, stride=2)
    y3 = jax.block_until_ready(block_fn(x3, params3, stride=2))
    assert y3.shape == (1, 8, 5, 5)
    np.testing.assert_allclose(np.asarray(y3), np.asarray(ref_block(x3, params3, 2)),
                               rtol=RTOL, atol=ATOL)

    print("KERNEL_OK")
</pallas_src>

<mosaic_0001>
module attributes {stable_mosaic.version = 11 : i64} {
  func.func @_bn_apply_kernel(%arg0: i32, %arg1: memref<128x128xf32, #tpu.memory_space<vmem>>, %arg2: memref<1x128xf32, #tpu.memory_space<vmem>>, %arg3: memref<1x128xf32, #tpu.memory_space<vmem>>, %arg4: memref<128x128xf32, #tpu.memory_space<vmem>>) attributes {dimension_semantics = [#tpu.dimension_semantics<parallel>], iteration_bounds = array<i64: 1>, scalar_prefetch = 0 : i64, scratch_operands = 0 : i64, tpu.core_type = #tpu.core_type<tc>, window_params = [{transform_indices = @transform_0, window_bounds = array<i64: 128, 128>}, {pipeline_mode = #tpu.pipeline_mode<synchronous>, transform_indices = @transform_1, window_bounds = array<i64: 1, 128>}, {pipeline_mode = #tpu.pipeline_mode<synchronous>, transform_indices = @transform_2, window_bounds = array<i64: 1, 128>}, {transform_indices = @transform_3, window_bounds = array<i64: 128, 128>}]} {
    %c0 = arith.constant 0 : index
    %c0_0 = arith.constant 0 : index
    %0 = vector.load %arg1[%c0, %c0_0] : memref<128x128xf32, #tpu.memory_space<vmem>>, vector<128x128xf32>
    %c0_1 = arith.constant 0 : index
    %c0_2 = arith.constant 0 : index
    %1 = vector.load %arg2[%c0_1, %c0_2] : memref<1x128xf32, #tpu.memory_space<vmem>>, vector<1x128xf32>
    %2 = vector.broadcast %1 : vector<1x128xf32> to vector<128x128xf32>
    %3 = arith.mulf %0, %2 : vector<128x128xf32>
    %c0_3 = arith.constant 0 : index
    %c0_4 = arith.constant 0 : index
    %4 = vector.load %arg3[%c0_3, %c0_4] : memref<1x128xf32, #tpu.memory_space<vmem>>, vector<1x128xf32>
    %5 = vector.broadcast %4 : vector<1x128xf32> to vector<128x128xf32>
    %6 = arith.addf %3, %5 : vector<128x128xf32>
    %cst = arith.constant 0.000000e+00 : f32
    %7 = vector.broadcast %cst : f32 to vector<128x128xf32>
    %8 = arith.maximumf %6, %7 : vector<128x128xf32>
    %c0_5 = arith.constant 0 : index
    %c0_6 = arith.constant 0 : index
    %9 = vector.load %arg4[%c0_5, %c0_6] : memref<128x128xf32, #tpu.memory_space<vmem>>, vector<128x128xf32>
    tpu.vector_store %arg4[%c0_5, %c0_6], %8 {strides = array<i32>} : memref<128x128xf32, #tpu.memory_space<vmem>>, vector<128x128xf32>,
    return
  }
  func.func @transform_0(%arg0: i32) -> (i32, i32) {
    %c0_i32 = arith.constant 0 : i32
    %c0_i32_0 = arith.constant 0 : i32
    return %arg0, %c0_i32 : i32, i32
  }
  func.func @transform_1(%arg0: i32) -> (i32, i32) {
    %c0_i32 = arith.constant 0 : i32
    %c0_i32_0 = arith.constant 0 : i32
    %c0_i32_1 = arith.constant 0 : i32
    return %c0_i32, %c0_i32_0 : i32, i32
  }
  func.func @transform_2(%arg0: i32) -> (i32, i32) {
    %c0_i32 = arith.constant 0 : i32
    %c0_i32_0 = arith.constant 0 : i32
    %c0_i32_1 = arith.constant 0 : i32
    return %c0_i32, %c0_i32_0 : i32, i32
  }
  func.func @transform_3(%arg0: i32) -> (i32, i32) {
    %c0_i32 = arith.constant 0 : i32
    %c0_i32_0 = arith.constant 0 : i32
    return %arg0, %c0_i32 : i32, i32
  }
}

module attributes {stable_mosaic.version = 11 : i64} {
  func.func @_conv_stats_kernel(%arg0: i32, %arg1: memref<128x36xbf16, #tpu.memory_space<vmem>>, %arg2: memref<36x128xbf16, #tpu.memory_space<vmem>>, %arg3: memref<1x128xf32, #tpu.memory_space<vmem>>, %arg4: memref<128x128xf32, #tpu.memory_space<vmem>>, %arg5: memref<2x128xf32, #tpu.memory_space<vmem>>) attributes {dimension_semantics = [#tpu.dimension_semantics<arbitrary>], iteration_bounds = array<i64: 1>, scalar_prefetch = 0 : i64, scratch_operands = 0 : i64, tpu.core_type = #tpu.core_type<tc>, window_params = [{transform_indices = @transform_0, window_bounds = array<i64: 128, 36>}, {pipeline_mode = #tpu.pipeline_mode<synchronous>, transform_indices = @transform_1, window_bounds = array<i64: 36, 128>}, {pipeline_mode = #tpu.pipeline_mode<synchronous>, transform_indices = @transform_2, window_bounds = array<i64: 1, 128>}, {transform_indices = @transform_3, window_bounds = array<i64: 128, 128>}, {pipeline_mode = #tpu.pipeline_mode<synchronous>, transform_indices = @transform_4, window_bounds = array<i64: 2, 128>}]} {
    %c0 = arith.constant 0 : index
    %c0_0 = arith.constant 0 : index
    %0 = vector.load %arg1[%c0, %c0_0] : memref<128x36xbf16, #tpu.memory_space<vmem>>, vector<128x36xbf16>
    %c0_1 = arith.constant 0 : index
    %c0_2 = arith.constant 0 : index
    %1 = vector.load %arg2[%c0_1, %c0_2] : memref<36x128xbf16, #tpu.memory_space<vmem>>, vector<36x128xbf16>
    %cst = arith.constant dense<0.000000e+00> : vector<128x128xf32>
    %2 = tpu.matmul %0, %1, %cst {dimension_numbers = #tpu.dot_dimension_numbers<[1], [0], [0], [1], [0, 0, 1, 1], [], []>} : vector<128x36xbf16>, vector<36x128xbf16>, vector<128x128xf32> -> vector<128x128xf32>
    %c0_3 = arith.constant 0 : index
    %c0_4 = arith.constant 0 : index
    %3 = vector.load %arg3[%c0_3, %c0_4] : memref<1x128xf32, #tpu.memory_space<vmem>>, vector<1x128xf32>
    %4 = vector.broadcast %3 : vector<1x128xf32> to vector<128x128xf32>
    %5 = arith.addf %2, %4 : vector<128x128xf32>
    %c0_5 = arith.constant 0 : index
    %c0_6 = arith.constant 0 : index
    %6 = vector.load %arg4[%c0_5, %c0_6] : memref<128x128xf32, #tpu.memory_space<vmem>>, vector<128x128xf32>
    tpu.vector_store %arg4[%c0_5, %c0_6], %5 {strides = array<i32>} : memref<128x128xf32, #tpu.memory_space<vmem>>, vector<128x128xf32>,
    %cst_7 = arith.constant dense<0.000000e+00> : vector<128xf32>
    %7 = vector.multi_reduction <add>, %5, %cst_7 [0] : vector<128x128xf32> to vector<128xf32>
    %8 = vector.shape_cast %7 : vector<128xf32> to vector<1x128xf32>
    %9 = arith.mulf %5, %5 : vector<128x128xf32>
    %cst_8 = arith.constant dense<0.000000e+00> : vector<128xf32>
    %10 = vector.multi_reduction <add>, %9, %cst_8 [0] : vector<128x128xf32> to vector<128xf32>
    %11 = vector.shape_cast %10 : vector<128xf32> to vector<1x128xf32>
    %12 = tpu.concatenate %8, %11 in 0 : vector<1x128xf32>, vector<1x128xf32> -> vector<2x128xf32>
    %c0_i32 = arith.constant 0 : i32
    %13 = arith.cmpi eq, %arg0, %c0_i32 : i32
    %14 = arith.extui %13 : i1 to i32
    %c0_i32_9 = arith.constant 0 : i32
    %15 = arith.cmpi ne, %14, %c0_i32_9 : i32
    scf.if %15 {
      %c0_12 = arith.constant 0 : index
      %c0_13 = arith.constant 0 : index
      %19 = vector.load %arg5[%c0_12, %c0_13] : memref<2x128xf32, #tpu.memory_space<vmem>>, vector<2x128xf32>
      tpu.vector_store %arg5[%c0_12, %c0_13], %12 {strides = array<i32>} : memref<2x128xf32, #tpu.memory_space<vmem>>, vector<2x128xf32>,
    } else {
    }
    %c0_i32_10 = arith.constant 0 : i32
    %16 = arith.cmpi sgt, %arg0, %c0_i32_10 : i32
    %17 = arith.extui %16 : i1 to i32
    %c0_i32_11 = arith.constant 0 : i32
    %18 = arith.cmpi ne, %17, %c0_i32_11 : i32
    scf.if %18 {
      %c0_12 = arith.constant 0 : index
      %c0_13 = arith.constant 0 : index
      %19 = vector.load %arg5[%c0_12, %c0_13] : memref<2x128xf32, #tpu.memory_space<vmem>>, vector<2x128xf32>
      %20 = arith.addf %19, %12 : vector<2x128xf32>
      %c0_14 = arith.constant 0 : index
      %c0_15 = arith.constant 0 : index
      %21 = vector.load %arg5[%c0_14, %c0_15] : memref<2x128xf32, #tpu.memory_space<vmem>>, vector<2x128xf32>
      tpu.vector_store %arg5[%c0_14, %c0_15], %20 {strides = array<i32>} : memref<2x128xf32, #tpu.memory_space<vmem>>, vector<2x128xf32>,
    } else {
    }
    return
  }
  func.func @transform_0(%arg0: i32) -> (i32, i32) {
    %c0_i32 = arith.constant 0 : i32
    %c0_i32_0 = arith.constant 0 : i32
    return %arg0, %c0_i32 : i32, i32
  }
  func.func @transform_1(%arg0: i32) -> (i32, i32) {
    %c0_i32 = arith.constant 0 : i32
    %c0_i32_0 = arith.constant 0 : i32
    %c0_i32_1 = arith.constant 0 : i32
    return %c0_i32, %c0_i32_0 : i32, i32
  }
  func.func @transform_2(%arg0: i32) -> (i32, i32) {
    %c0_i32 = arith.constant 0 : i32
    %c0_i32_0 = arith.constant 0 : i32
    %c0_i32_1 = arith.constant 0 : i32
    return %c0_i32, %c0_i32_0 : i32, i32
  }
  func.func @transform_3(%arg0: i32) -> (i32, i32) {
    %c0_i32 = arith.constant 0 : i32
    %c0_i32_0 = arith.constant 0 : i32
    return %arg0, %c0_i32 : i32, i32
  }
  func.func @transform_4(%arg0: i32) -> (i32, i32) {
    %c0_i32 = arith.constant 0 : i32
    %c0_i32_0 = arith.constant 0 : i32
    %c0_i32_1 = arith.constant 0 : i32
    return %c0_i32, %c0_i32_0 : i32, i32
  }
}

module attributes {stable_mosaic.version = 11 : i64} {
  func.func @_conv_stats_kernel(%arg0: i32, %arg1: memref<128x72xbf16, #tpu.memory_space<vmem>>, %arg2: memref<72x128xbf16, #tpu.memory_space<vmem>>, %arg3: memref<1x128xf32, #tpu.memory_space<vmem>>, %arg4: memref<128x4xbf16, #tpu.memory_space<vmem>>, %arg5: memref<4x128xbf16, #tpu.memory_space<vmem>>, %arg6: memref<1x128xf32, #tpu.memory_space<vmem>>, %arg7: memref<128x128xf32, #tpu.memory_space<vmem>>, %arg8: memref<128x128xf32, #tpu.memory_space<vmem>>, %arg9: memref<2x128xf32, #tpu.memory_space<vmem>>, %arg10: memref<2x128xf32, #tpu.memory_space<vmem>>) attributes {dimension_semantics = [#tpu.dimension_semantics<arbitrary>], iteration_bounds = array<i64: 1>, scalar_prefetch = 0 : i64, scratch_operands = 0 : i64, tpu.core_type = #tpu.core_type<tc>, window_params = [{transform_indices = @transform_0, window_bounds = array<i64: 128, 72>}, {pipeline_mode = #tpu.pipeline_mode<synchronous>, transform_indices = @transform_1, window_bounds = array<i64: 72, 128>}, {pipeline_mode = #tpu.pipeline_mode<synchronous>, transform_indices = @transform_2, window_bounds = array<i64: 1, 128>}, {transform_indices = @transform_3, window_bounds = array<i64: 128, 4>}, {pipeline_mode = #tpu.pipeline_mode<synchronous>, transform_indices = @transform_4, window_bounds = array<i64: 4, 128>}, {pipeline_mode = #tpu.pipeline_mode<synchronous>, transform_indices = @transform_5, window_bounds = array<i64: 1, 128>}, {transform_indices = @transform_6, window_bounds = array<i64: 128, 128>}, {transform_indices = @transform_7, window_bounds = array<i64: 128, 128>}, {pipeline_mode = #tpu.pipeline_mode<synchronous>, transform_indices = @transform_8, window_bounds = array<i64: 2, 128>}, {pipeline_mode = #tpu.pipeline_mode<synchronous>, transform_indices = @transform_9, window_bounds = array<i64: 2, 128>}]} {
    %c0 = arith.constant 0 : index
    %c0_0 = arith.constant 0 : index
    %0 = vector.load %arg1[%c0, %c0_0] : memref<128x72xbf16, #tpu.memory_space<vmem>>, vector<128x72xbf16>
    %c0_1 = arith.constant 0 : index
    %c0_2 = arith.constant 0 : index
    %1 = vector.load %arg2[%c0_1, %c0_2] : memref<72x128xbf16, #tpu.memory_space<vmem>>, vector<72x128xbf16>
    %cst = arith.constant dense<0.000000e+00> : vector<128x128xf32>
    %2 = tpu.matmul %0, %1, %cst {dimension_numbers = #tpu.dot_dimension_numbers<[1], [0], [0], [1], [0, 0, 1, 1], [], []>} : vector<128x72xbf16>, vector<72x128xbf16>, vector<128x128xf32> -> vector<128x128xf32>
    %c0_3 = arith.constant 0 : index
    %c0_4 = arith.constant 0 : index
    %3 = vector.load %arg3[%c0_3, %c0_4] : memref<1x128xf32, #tpu.memory_space<vmem>>, vector<1x128xf32>
    %4 = vector.broadcast %3 : vector<1x128xf32> to vector<128x128xf32>
    %5 = arith.addf %2, %4 : vector<128x128xf32>
    %c0_5 = arith.constant 0 : index
    %c0_6 = arith.constant 0 : index
    %6 = vector.load %arg7[%c0_5, %c0_6] : memref<128x128xf32, #tpu.memory_space<vmem>>, vector<128x128xf32>
    tpu.vector_store %arg7[%c0_5, %c0_6], %5 {strides = array<i32>} : memref<128x128xf32, #tpu.memory_space<vmem>>, vector<128x128xf32>,
    %cst_7 = arith.constant dense<0.000000e+00> : vector<128xf32>
    %7 = vector.multi_reduction <add>, %5, %cst_7 [0] : vector<128x128xf32> to vector<128xf32>
    %8 = vector.shape_cast %7 : vector<128xf32> to vector<1x128xf32>
    %9 = arith.mulf %5, %5 : vector<128x128xf32>
    %cst_8 = arith.constant dense<0.000000e+00> : vector<128xf32>
    %10 = vector.multi_reduction <add>, %9, %cst_8 [0] : vector<128x128xf32> to vector<128xf32>
    %11 = vector.shape_cast %10 : vector<128xf32> to vector<1x128xf32>
    %12 = tpu.concatenate %8, %11 in 0 : vector<1x128xf32>, vector<1x128xf32> -> vector<2x128xf32>
    %c0_i32 = arith.constant 0 : i32
    %13 = arith.cmpi eq, %arg0, %c0_i32 : i32
    %14 = arith.extui %13 : i1 to i32
    %c0_i32_9 = arith.constant 0 : i32
    %15 = arith.cmpi ne, %14, %c0_i32_9 : i32
    scf.if %15 {
      %c0_27 = arith.constant 0 : index
      %c0_28 = arith.constant 0 : index
      %38 = vector.load %arg9[%c0_27, %c0_28] : memref<2x128xf32, #tpu.memory_space<vmem>>, vector<2x128xf32>
      tpu.vector_store %arg9[%c0_27, %c0_28], %12 {strides = array<i32>} : memref<2x128xf32, #tpu.memory_space<vmem>>, vector<2x128xf32>,
    } else {
    }
    %c0_i32_10 = arith.constant 0 : i32
    %16 = arith.cmpi sgt, %arg0, %c0_i32_10 : i32
    %17 = arith.extui %16 : i1 to i32
    %c0_i32_11 = arith.constant 0 : i32
    %18 = arith.cmpi ne, %17, %c0_i32_11 : i32
    scf.if %18 {
      %c0_27 = arith.constant 0 : index
      %c0_28 = arith.constant 0 : index
      %38 = vector.load %arg9[%c0_27, %c0_28] : memref<2x128xf32, #tpu.memory_space<vmem>>, vector<2x128xf32>
      %39 = arith.addf %38, %12 : vector<2x128xf32>
      %c0_29 = arith.constant 0 : index
      %c0_30 = arith.constant 0 : index
      %40 = vector.load %arg9[%c0_29, %c0_30] : memref<2x128xf32, #tpu.memory_space<vmem>>, vector<2x128xf32>
      tpu.vector_store %arg9[%c0_29, %c0_30], %39 {strides = array<i32>} : memref<2x128xf32, #tpu.memory_space<vmem>>, vector<2x128xf32>,
    } else {
    }
    %c0_12 = arith.constant 0 : index
    %c0_13 = arith.constant 0 : index
    %19 = vector.load %arg4[%c0_12, %c0_13] : memref<128x4xbf16, #tpu.memory_space<vmem>>, vector<128x4xbf16>
    %c0_14 = arith.constant 0 : index
    %c0_15 = arith.constant 0 : index
    %20 = vector.load %arg5[%c0_14, %c0_15] : memref<4x128xbf16, #tpu.memory_space<vmem>>, vector<4x128xbf16>
    %cst_16 = arith.constant dense<0.000000e+00> : vector<128x128xf32>
    %21 = tpu.matmul %19, %20, %cst_16 {dimension_numbers = #tpu.dot_dimension_numbers<[1], [0], [0], [1], [0, 0, 1, 1], [], []>} : vector<128x4xbf16>, vector<4x128xbf16>, vector<128x128xf32> -> vector<128x128xf32>
    %c0_17 = arith.constant 0 : index
    %c0_18 = arith.constant 0 : index
    %22 = vector.load %arg6[%c0_17, %c0_18] : memref<1x128xf32, #tpu.memory_space<vmem>>, vector<1x128xf32>
    %23 = vector.broadcast %22 : vector<1x128xf32> to vector<128x128xf32>
    %24 = arith.addf %21, %23 : vector<128x128xf32>
    %c0_19 = arith.constant 0 : index
    %c0_20 = arith.constant 0 : index
    %25 = vector.load %arg8[%c0_19, %c0_20] : memref<128x128xf32, #tpu.memory_space<vmem>>, vector<128x128xf32>
    tpu.vector_store %arg8[%c0_19, %c0_20], %24 {strides = array<i32>} : memref<128x128xf32, #tpu.memory_space<vmem>>, vector<128x128xf32>,
    %cst_21 = arith.constant dense<0.000000e+00> : vector<128xf32>
    %26 = vector.multi_reduction <add>, %24, %cst_21 [0] : vector<128x128xf32> to vector<128xf32>
    %27 = vector.shape_cast %26 : vector<128xf32> to vector<1x128xf32>
    %28 = arith.mulf %24, %24 : vector<128x128xf32>
    %cst_22 = arith.constant dense<0.000000e+00> : vector<128xf32>
    %29 = vector.multi_reduction <add>, %28, %cst_22 [0] : vector<128x128xf32> to vector<128xf32>
    %30 = vector.shape_cast %29 : vector<128xf32> to vector<1x128xf32>
    %31 = tpu.concatenate %27, %30 in 0 : vector<1x128xf32>, vector<1x128xf32> -> vector<2x128xf32>
    %c0_i32_23 = arith.constant 0 : i32
    %32 = arith.cmpi eq, %arg0, %c0_i32_23 : i32
    %33 = arith.extui %32 : i1 to i32
    %c0_i32_24 = arith.constant 0 : i32
    %34 = arith.cmpi ne, %33, %c0_i32_24 : i32
    scf.if %34 {
      %c0_27 = arith.constant 0 : index
      %c0_28 = arith.constant 0 : index
      %38 = vector.load %arg10[%c0_27, %c0_28] : memref<2x128xf32, #tpu.memory_space<vmem>>, vector<2x128xf32>
      tpu.vector_store %arg10[%c0_27, %c0_28], %31 {strides = array<i32>} : memref<2x128xf32, #tpu.memory_space<vmem>>, vector<2x128xf32>,
    } else {
    }
    %c0_i32_25 = arith.constant 0 : i32
    %35 = arith.cmpi sgt, %arg0, %c0_i32_25 : i32
    %36 = arith.extui %35 : i1 to i32
    %c0_i32_26 = arith.constant 0 : i32
    %37 = arith.cmpi ne, %36, %c0_i32_26 : i32
    scf.if %37 {
      %c0_27 = arith.constant 0 : index
      %c0_28 = arith.constant 0 : index
      %38 = vector.load %arg10[%c0_27, %c0_28] : memref<2x128xf32, #tpu.memory_space<vmem>>, vector<2x128xf32>
      %39 = arith.addf %38, %31 : vector<2x128xf32>
      %c0_29 = arith.constant 0 : index
      %c0_30 = arith.constant 0 : index
      %40 = vector.load %arg10[%c0_29, %c0_30] : memref<2x128xf32, #tpu.memory_space<vmem>>, vector<2x128xf32>
      tpu.vector_store %arg10[%c0_29, %c0_30], %39 {strides = array<i32>} : memref<2x128xf32, #tpu.memory_space<vmem>>, vector<2x128xf32>,
    } else {
    }
    return
  }
  func.func @transform_0(%arg0: i32) -> (i32, i32) {
    %c0_i32 = arith.constant 0 : i32
    %c0_i32_0 = arith.constant 0 : i32
    return %arg0, %c0_i32 : i32, i32
  }
  func.func @transform_1(%arg0: i32) -> (i32, i32) {
    %c0_i32 = arith.constant 0 : i32
    %c0_i32_0 = arith.constant 0 : i32
    %c0_i32_1 = arith.constant 0 : i32
    return %c0_i32, %c0_i32_0 : i32, i32
  }
  func.func @transform_2(%arg0: i32) -> (i32, i32) {
    %c0_i32 = arith.constant 0 : i32
    %c0_i32_0 = arith.constant 0 : i32
    %c0_i32_1 = arith.constant 0 : i32
    return %c0_i32, %c0_i32_0 : i32, i32
  }
  func.func @transform_3(%arg0: i32) -> (i32, i32) {
    %c0_i32 = arith.constant 0 : i32
    %c0_i32_0 = arith.constant 0 : i32
    return %arg0, %c0_i32 : i32, i32
  }
  func.func @transform_4(%arg0: i32) -> (i32, i32) {
    %c0_i32 = arith.constant 0 : i32
    %c0_i32_0 = arith.constant 0 : i32
    %c0_i32_1 = arith.constant 0 : i32
    return %c0_i32, %c0_i32_0 : i32, i32
  }
  func.func @transform_5(%arg0: i32) -> (i32, i32) {
    %c0_i32 = arith.constant 0 : i32
    %c0_i32_0 = arith.constant 0 : i32
    %c0_i32_1 = arith.constant 0 : i32
    return %c0_i32, %c0_i32_0 : i32, i32
  }
  func.func @transform_6(%arg0: i32) -> (i32, i32) {
    %c0_i32 = arith.constant 0 : i32
    %c0_i32_0 = arith.constant 0 : i32
    return %arg0, %c0_i32 : i32, i32
  }
  func.func @transform_7(%arg0: i32) -> (i32, i32) {
    %c0_i32 = arith.constant 0 : i32
    %c0_i32_0 = arith.constant 0 : i32
    return %arg0, %c0_i32 : i32, i32
  }
  func.func @transform_8(%arg0: i32) -> (i32, i32) {
    %c0_i32 = arith.constant 0 : i32
    %c0_i32_0 = arith.constant 0 : i32
    %c0_i32_1 = arith.constant 0 : i32
    return %c0_i32, %c0_i32_0 : i32, i32
  }
  func.func @transform_9(%arg0: i32) -> (i32, i32) {
    %c0_i32 = arith.constant 0 : i32
    %c0_i32_0 = arith.constant 0 : i32
    %c0_i32_1 = arith.constant 0 : i32
    return %c0_i32, %c0_i32_0 : i32, i32
  }
}

module attributes {stable_mosaic.version = 11 : i64} {
  func.func @_bn_apply_kernel(%arg0: i32, %arg1: memref<128x128xf32, #tpu.memory_space<vmem>>, %arg2: memref<1x128xf32, #tpu.memory_space<vmem>>, %arg3: memref<1x128xf32, #tpu.memory_space<vmem>>, %arg4: memref<128x128xf32, #tpu.memory_space<vmem>>, %arg5: memref<1x128xf32, #tpu.memory_space<vmem>>, %arg6: memref<1x128xf32, #tpu.memory_space<vmem>>, %arg7: memref<128x128xf32, #tpu.memory_space<vmem>>) attributes {dimension_semantics = [#tpu.dimension_semantics<parallel>], iteration_bounds = array<i64: 1>, scalar_prefetch = 0 : i64, scratch_operands = 0 : i64, tpu.core_type = #tpu.core_type<tc>, window_params = [{transform_indices = @transform_0, window_bounds = array<i64: 128, 128>}, {pipeline_mode = #tpu.pipeline_mode<synchronous>, transform_indices = @transform_1, window_bounds = array<i64: 1, 128>}, {pipeline_mode = #tpu.pipeline_mode<synchronous>, transform_indices = @transform_2, window_bounds = array<i64: 1, 128>}, {transform_indices = @transform_3, window_bounds = array<i64: 128, 128>}, {pipeline_mode = #tpu.pipeline_mode<synchronous>, transform_indices = @transform_4, window_bounds = array<i64: 1, 128>}, {pipeline_mode = #tpu.pipeline_mode<synchronous>, transform_indices = @transform_5, window_bounds = array<i64: 1, 128>}, {transform_indices = @transform_6, window_bounds = array<i64: 128, 128>}]} {
    %c0 = arith.constant 0 : index
    %c0_0 = arith.constant 0 : index
    %0 = vector.load %arg1[%c0, %c0_0] : memref<128x128xf32, #tpu.memory_space<vmem>>, vector<128x128xf32>
    %c0_1 = arith.constant 0 : index
    %c0_2 = arith.constant 0 : index
    %1 = vector.load %arg2[%c0_1, %c0_2] : memref<1x128xf32, #tpu.memory_space<vmem>>, vector<1x128xf32>
    %2 = vector.broadcast %1 : vector<1x128xf32> to vector<128x128xf32>
    %3 = arith.mulf %0, %2 : vector<128x128xf32>
    %c0_3 = arith.constant 0 : index
    %c0_4 = arith.constant 0 : index
    %4 = vector.load %arg3[%c0_3, %c0_4] : memref<1x128xf32, #tpu.memory_space<vmem>>, vector<1x128xf32>
    %5 = vector.broadcast %4 : vector<1x128xf32> to vector<128x128xf32>
    %6 = arith.addf %3, %5 : vector<128x128xf32>
    %c0_5 = arith.constant 0 : index
    %c0_6 = arith.constant 0 : index
    %7 = vector.load %arg4[%c0_5, %c0_6] : memref<128x128xf32, #tpu.memory_space<vmem>>, vector<128x128xf32>
    %c0_7 = arith.constant 0 : index
    %c0_8 = arith.constant 0 : index
    %8 = vector.load %arg5[%c0_7, %c0_8] : memref<1x128xf32, #tpu.memory_space<vmem>>, vector<1x128xf32>
    %9 = vector.broadcast %8 : vector<1x128xf32> to vector<128x128xf32>
    %10 = arith.mulf %7, %9 : vector<128x128xf32>
    %11 = arith.addf %6, %10 : vector<128x128xf32>
    %c0_9 = arith.constant 0 : index
    %c0_10 = arith.constant 0 : index
    %12 = vector.load %arg6[%c0_9, %c0_10] : memref<1x128xf32, #tpu.memory_space<vmem>>, vector<1x128xf32>
    %13 = vector.broadcast %12 : vector<1x128xf32> to vector<128x128xf32>
    %14 = arith.addf %11, %13 : vector<128x128xf32>
    %cst = arith.constant 0.000000e+00 : f32
    %15 = vector.broadcast %cst : f32 to vector<128x128xf32>
    %16 = arith.maximumf %14, %15 : vector<128x128xf32>
    %c0_11 = arith.constant 0 : index
    %c0_12 = arith.constant 0 : index
    %17 = vector.load %arg7[%c0_11, %c0_12] : memref<128x128xf32, #tpu.memory_space<vmem>>, vector<128x128xf32>
    tpu.vector_store %arg7[%c0_11, %c0_12], %16 {strides = array<i32>} : memref<128x128xf32, #tpu.memory_space<vmem>>, vector<128x128xf32>,
    return
  }
  func.func @transform_0(%arg0: i32) -> (i32, i32) {
    %c0_i32 = arith.constant 0 : i32
    %c0_i32_0 = arith.constant 0 : i32
    return %arg0, %c0_i32 : i32, i32
  }
  func.func @transform_1(%arg0: i32) -> (i32, i32) {
    %c0_i32 = arith.constant 0 : i32
    %c0_i32_0 = arith.constant 0 : i32
    %c0_i32_1 = arith.constant 0 : i32
    return %c0_i32, %c0_i32_0 : i32, i32
  }
  func.func @transform_2(%arg0: i32) -> (i32, i32) {
    %c0_i32 = arith.constant 0 : i32
    %c0_i32_0 = arith.constant 0 : i32
    %c0_i32_1 = arith.constant 0 : i32
    return %c0_i32, %c0_i32_0 : i32, i32
  }
  func.func @transform_3(%arg0: i32) -> (i32, i32) {
    %c0_i32 = arith.constant 0 : i32
    %c0_i32_0 = arith.constant 0 : i32
    return %arg0, %c0_i32 : i32, i32
  }
  func.func @transform_4(%arg0: i32) -> (i32, i32) {
    %c0_i32 = arith.constant 0 : i32
    %c0_i32_0 = arith.constant 0 : i32
    %c0_i32_1 = arith.constant 0 : i32
    return %c0_i32, %c0_i32_0 : i32, i32
  }
  func.func @transform_5(%arg0: i32) -> (i32, i32) {
    %c0_i32 = arith.constant 0 : i32
    %c0_i32_0 = arith.constant 0 : i32
    %c0_i32_1 = arith.constant 0 : i32
    return %c0_i32, %c0_i32_0 : i32, i32
  }
  func.func @transform_6(%arg0: i32) -> (i32, i32) {
    %c0_i32 = arith.constant 0 : i32
    %c0_i32_0 = arith.constant 0 : i32
    return %arg0, %c0_i32 : i32, i32
  }
}

</mosaic_0001>

<bundles_post_ra>
// kernel: res_encoder_block.5
= control target key start
LH: loop header
LB: loop body
LE: loop exit
PB: predicated region body
PF: predicated region fallthrough
CT: control target
= control target key end

     0   :  { %s254_s0 = inlined_call_operand.vmem [shape: f32[128,128], index: 0, kind: input, shape index: {}]   ;;  %s255_s1 = inlined_call_operand.vmem [shape: f32[1,128], index: 1, kind: input, shape index: {}]   ;;  %s256_s2 = inlined_call_operand.vmem [shape: f32[1,128], index: 2, kind: input, shape index: {}]   ;;  %s257_s3 = inlined_call_operand.vmem [shape: f32[128,128], index: 3, kind: output, shape index: {}]  }
   0x1   :  { %v14_v0 = vld [vmem:[%s254_s0] sm:$0xff]  ;;  %v15_v4 = vld [vmem:[%s254_s0 + $0x8] sm:$0xff]  ;;  %v16_v5 = vld [vmem:[%s254_s0 + $0x10] sm:$0xff] }
   0x2   :  { %v112_v1 = vld [vmem:[%s255_s1] ss:$0 sm:$0xff]  ;;  %v17_v6 = vld [vmem:[%s254_s0 + $0x18] sm:$0xff]  ;;  %v19_v11 = vld [vmem:[%s254_s0 + $0x28] sm:$0xff] }
   0x3   :  { %v143_v2 = vld [vmem:[%s256_s2] ss:$0 sm:$0xff]  ;;  %v37_v3 = vmul.f32 %v112_v1, %v14_v0  ;;  %v38_v7 = vmul.f32 %v112_v1, %v15_v4  ;;  %v39_v8 = vmul.f32 %v112_v1, %v16_v5  ;;  %v40_v9 = vmul.f32 %v112_v1, %v17_v6  ;;  %v20_v12 = vld [vmem:[%s254_s0 + $0x30] sm:$0xff]  ;;  %v21_v17 = vld [vmem:[%s254_s0 + $0x38] sm:$0xff] }
   0x4   :  { %v18_v10 = vld [vmem:[%s254_s0 + $0x20] sm:$0xff]  ;;  %v42_v15 = vmul.f32 %v112_v1, %v19_v11  ;;  %v43_v16 = vmul.f32 %v112_v1, %v20_v12  ;;  %v44_v21 = vmul.f32 %v112_v1, %v21_v17  ;;  %v23_v27 = vld [vmem:[%s254_s0 + $0x48] sm:$0xff]  ;;  %v24_v28 = vld [vmem:[%s254_s0 + $0x50] sm:$0xff] }
   0x5   :  { %v60_v13 = vadd.f32 %v143_v2, %v37_v3  ;;  %v41_v14 = vmul.f32 %v112_v1, %v18_v10  ;;  %v61_v18 = vadd.f32 %v143_v2, %v38_v7  ;;  %v62_v19 = vadd.f32 %v143_v2, %v39_v8  ;;  %v22_v22 = vld [vmem:[%s254_s0 + $0x40] sm:$0xff]  ;;  %v25_v29 = vld [vmem:[%s254_s0 + $0x58] sm:$0xff]  ;;  %v27_v35 = vld [vmem:[%s254_s0 + $0x68] sm:$0xff] }
   0x6   :  { %v63_v20 = vadd.f32 %v143_v2, %v40_v9  ;;  %v65_v25 = vadd.f32 %v143_v2, %v42_v15  ;;  %v66_v26 = vadd.f32 %v143_v2, %v43_v16  ;;  %v67_v33 = vadd.f32 %v143_v2, %v44_v21  ;;  %v26_v34 = vld [vmem:[%s254_s0 + $0x60] sm:$0xff]  ;;  %v28_v36 = vld [vmem:[%s254_s0 + $0x70] sm:$0xff]  ;;  %v29_v41 = vld [vmem:[%s254_s0 + $0x78] sm:$0xff] }
   0x7   :  { %v76_v23 = vmax.f32 %v60_v13, 0.0  ;;  %v64_v24 = vadd.f32 %v143_v2, %v41_v14  ;;  %v77_v30 = vmax.f32 %v61_v18, 0.0  ;;  %v78_v31 = vmax.f32 %v62_v19, 0.0 }
   0x8   :  { %v79_v32 = vmax.f32 %v63_v20, 0.0  ;;  %v81_v38 = vmax.f32 %v65_v25, 0.0  ;;  %v82_v39 = vmax.f32 %v66_v26, 0.0  ;;  %v45_v40 = vmul.f32 %v112_v1, %v22_v22 }
   0x9   :  { %92 = vst [vmem:[%s257_s3] sm:$0xff] %v76_v23  ;;  %v80_v37 = vmax.f32 %v64_v24, 0.0  ;;  %93 = vst [vmem:[%s257_s3 + $0x8] sm:$0xff] %v77_v30  ;;  %v83_v42 = vmax.f32 %v67_v33, 0.0  ;;  %v46_v43 = vmul.f32 %v112_v1, %v23_v27  ;;  %v47_v44 = vmul.f32 %v112_v1, %v24_v28 }
   0xa   :  { %94 = vst [vmem:[%s257_s3 + $0x10] sm:$0xff] %v78_v31  ;;  %95 = vst [vmem:[%s257_s3 + $0x18] sm:$0xff] %v79_v32  ;;  %v48_v45 = vmul.f32 %v112_v1, %v25_v29  ;;  %v68_v46 = vadd.f32 %v143_v2, %v45_v40  ;;  %v49_v47 = vmul.f32 %v112_v1, %v26_v34 }
   0xb   :  { %96 = vst [vmem:[%s257_s3 + $0x20] sm:$0xff] %v80_v37  ;;  %97 = vst [vmem:[%s257_s3 + $0x28] sm:$0xff] %v81_v38  ;;  %v50_v48 = vmul.f32 %v112_v1, %v27_v35  ;;  %v51_v49 = vmul.f32 %v112_v1, %v28_v36  ;;  %v69_v50 = vadd.f32 %v143_v2, %v46_v43 }
   0xc   :  { %98 = vst [vmem:[%s257_s3 + $0x30] sm:$0xff] %v82_v39  ;;  %99 = vst [vmem:[%s257_s3 + $0x38] sm:$0xff] %v83_v42  ;;  %v70_v51 = vadd.f32 %v143_v2, %v47_v44  ;;  %v71_v52 = vadd.f32 %v143_v2, %v48_v45  ;;  %v52_v53 = vmul.f32 %v112_v1, %v29_v41  ;;  %v84_v54 = vmax.f32 %v68_v46, 0.0 }
   0xd   :  { %v72_v55 = vadd.f32 %v143_v2, %v49_v47  ;;  %v73_v56 = vadd.f32 %v143_v2, %v50_v48  ;;  %v74_v57 = vadd.f32 %v143_v2, %v51_v49  ;;  %v85_v58 = vmax.f32 %v69_v50, 0.0 }
   0xe   :  { %v86_v59 = vmax.f32 %v70_v51, 0.0  ;;  %v87_v60 = vmax.f32 %v71_v52, 0.0  ;;  %v75_v61 = vadd.f32 %v143_v2, %v52_v53  ;;  %100 = vst [vmem:[%s257_s3 + $0x40] sm:$0xff] %v84_v54 }
   0xf   :  { %v88_v62 = vmax.f32 %v72_v55, 0.0  ;;  %v89_v63 = vmax.f32 %v73_v56, 0.0  ;;  %v90_v0 = vmax.f32 %v74_v57, 0.0  ;;  %101 = vst [vmem:[%s257_s3 + $0x48] sm:$0xff] %v85_v58 }
  0x10   :  { %102 = vst [vmem:[%s257_s3 + $0x50] sm:$0xff] %v86_v59  ;;  %103 = vst [vmem:[%s257_s3 + $0x58] sm:$0xff] %v87_v60  ;;  %v91_v1 = vmax.f32 %v75_v61, 0.0 }
  0x11   :  { %104 = vst [vmem:[%s257_s3 + $0x60] sm:$0xff] %v88_v62  ;;  %105 = vst [vmem:[%s257_s3 + $0x68] sm:$0xff] %v89_v63 }
  0x12   :  { %106 = vst [vmem:[%s257_s3 + $0x70] sm:$0xff] %v90_v0  ;;  %107 = vst [vmem:[%s257_s3 + $0x78] sm:$0xff] %v91_v1 }

// kernel: res_encoder_block.4
= control target key start
LH: loop header
LB: loop body
LE: loop exit
PB: predicated region body
PF: predicated region fallthrough
CT: control target
= control target key end

     0   :  { %vm100_vm0 = vcmask 293888   ;;  %vm125_vm1 = vcmask 1041408   ;;  %vm300_vm2 = vcmask 1040384   ;;  %s526_s1 = inlined_call_operand.vmem [shape: bf16[36,128], index: 1, kind: input, shape index: {}]   ;;  %s527_s0 = inlined_call_operand.vmem [shape: bf16[128,36], index: 0, kind: input, shape index: {}]   ;;  %s528_s2 = inlined_call_operand.vmem [shape: f32[1,128], index: 2, kind: input, shape index: {}]   ;;  %s529_s3 = inlined_call_operand.vmem [shape: f32[128,128], index: 3, kind: output, shape index: {0}]   ;;  %s530_s4 = inlined_call_operand.vmem [shape: f32[2,128], index: 4, kind: output, shape index: {1}]  }
   0x1   :  { %v383_v0 = vld [vmem:[%s526_s1] sm:$0xff]   ;;  %v384_v1 = vld [vmem:[%s526_s1 + $0x8] sm:$0xff]   ;;  %v385_v2 = vld [vmem:[%s526_s1 + $0x10] ss:$0 sps:$4 sm:$0x33]  }
   0x2   :  { %353 = vmatprep.subr.bf16.mxu0 %v383_v0  ;;  %v386_v3 = vld [vmem:[%s527_s0] sm:$0xff]   ;;  %375 = vmatprep.subr.bf16.mxu1 %v383_v0  ;;  %v127_v5 = vsel %vm125_vm1, %v385_v2, 0  ;;  %v387_v6 = vld [vmem:[%s527_s0 + $0x8] sm:$0xff]   ;;  %v388_v8 = vld [vmem:[%s527_s0 + $0x10] sm:$0xff]  }
   0x3   :  { %354 = vmatpush3.bf16.msra.mxu0 %v383_v0  ;;  %378 = vmatpush3.bf16.msra.mxu1 %v383_v0  ;;  %v390_v4 = vld [vmem:[%s527_s0 + $0x20] sm:$0xff]   ;;  %v391_v7 = vld [vmem:[%s527_s0 + $0x28] sm:$0xff]   ;;  %v392_v9 = vld [vmem:[%s527_s0 + $0x30] sm:$0xff]  }
   0x4   :  { %355 = vmatprep.subr.bf16.mxu0 %v384_v1  ;;  %359 = vmatprep.mubr.msk.bf16.mxu0 %vm100_vm0, %v386_v3  ;;  %v389_v10 = vld [vmem:[%s527_s0 + $0x18] sm:$0xff]   ;;  %v322_v12 = vld [vmem:[%s528_s2] ss:$0 sm:$0xff] }
   0x5   :  { %376 = vmatprep.subr.bf16.mxu1 %v384_v1  ;;  %367 = vmatprep.mubr.msk.bf16.mxu1 %vm100_vm0, %v390_v4  ;;  %v393_v11 = vld [vmem:[%s527_s0 + $0x38] sm:$0xff]  }
   0x7   :  { %356 = vmatpush3.bf16.msra.mxu0 %v384_v1  ;;  %379 = vmatpush3.bf16.msra.mxu1 %v384_v1 }
   0x8   :  { %381 = vmatprep.subr.msk.bf16.mxu0 %vm125_vm1, %v385_v2  ;;  %382 = vmatprep.subr.msk.bf16.mxu1 %vm125_vm1, %v385_v2 }
   0xb   :  { %358 = vmatpush3.bf16.msra.mxu0 %v127_v5  ;;  %380 = vmatpush3.bf16.msra.mxu1 %v127_v5 }
   0xe   :  { %360 = vmatmul.mubr.msk.bf16.vlgmr.msra.gmra.mrb[0].mxu0 %vm100_vm0, %v387_v6  ;;  %368 = vmatmul.mubr.msk.bf16.vlgmr.msra.gmra.mrb[0].mxu1 %vm100_vm0, %v391_v7 }
   0xf   :  { %363 = vmatprep.mubr.msk.bf16.mxu0 %vm100_vm0, %v388_v8  ;;  %371 = vmatprep.mubr.msk.bf16.mxu1 %vm100_vm0, %v392_v9 }
  0x16   :  { %364 = vmatmul.mubr.msk.bf16.gmra.mrb[4].mxu0 %vm100_vm0, %v389_v10  ;;  %372 = vmatmul.mubr.msk.bf16.gmra.mrb[4].mxu1 %vm100_vm0, %v393_v11 }
  0xe1   :  { %v361_v13 = vpop.f32.mrb[0].mxu0  ;;  %v369_v14 = vpop.f32.mrb[0].mxu1 }
  0xe2   :  { %v172_v15 = vadd.f32 %v361_v13, %v322_v12  ;;  %v163_v16 = vpop.f32.mrb[1].mxu0  ;;  %v463_v17 = vadd.f32 %v369_v14, %v322_v12  ;;  %v195_v18 = vpop.f32.mrb[1].mxu1 }
  0xe3   :  { %v164_v19 = vadd.f32 %v322_v12, %v163_v16  ;;  %v362_v20 = vpop.f32.mrb[2].mxu0  ;;  %v196_v21 = vadd.f32 %v322_v12, %v195_v18  ;;  %v370_v22 = vpop.f32.mrb[2].mxu1 }
  0xe4   :  { %228 = vst [vmem:[%s529_s3 + $0x10] sm:$0xff] %v172_v15  ;;  %v175_v23 = vadd.f32 %v362_v20, %v322_v12  ;;  %v166_v24 = vpop.f32.mrb[3].mxu0  ;;  %236 = vst [vmem:[%s529_s3 + $0x50] sm:$0xff] %v463_v17  ;;  %v472_v25 = vadd.f32 %v370_v22, %v322_v12  ;;  %v198_v26 = vpop.f32.mrb[3].mxu1  ;;  %v265_v32 = vmul.f32 %v172_v15, %v172_v15 }
  0xe5   :  { %226 = vst [vmem:[%s529_s3] sm:$0xff] %v164_v19  ;;  %v167_v27 = vadd.f32 %v322_v12, %v166_v24  ;;  %234 = vst [vmem:[%s529_s3 + $0x40] sm:$0xff] %v196_v21  ;;  %v199_v28 = vadd.f32 %v322_v12, %v198_v26  ;;  %v263_v29 = vmul.f32 %v164_v19, %v164_v19 }
  0xe6   :  { %229 = vst [vmem:[%s529_s3 + $0x18] sm:$0xff] %v175_v23  ;;  %237 = vst [vmem:[%s529_s3 + $0x58] sm:$0xff] %v472_v25  ;;  %v266_v37 = vmul.f32 %v175_v23, %v175_v23  ;;  %v271_v2 = vmul.f32 %v196_v21, %v196_v21  ;;  %v273_v8 = vmul.f32 %v463_v17, %v463_v17 }
  0xe7   :  { %227 = vst [vmem:[%s529_s3 + $0x8] sm:$0xff] %v167_v27  ;;  %v242_v30 = vadd.f32 %v167_v27, %v164_v19  ;;  %v264_v31 = vmul.f32 %v167_v27, %v167_v27  ;;  %235 = vst [vmem:[%s529_s3 + $0x48] sm:$0xff] %v199_v28  ;;  %v272_v7 = vmul.f32 %v199_v28, %v199_v28 }
  0xe8   :  { %v274_v11 = vmul.f32 %v472_v25, %v472_v25 }
  0xe9   :  { %v243_v33 = vadd.f32 %v242_v30, %v172_v15  ;;  %v279_v34 = vadd.f32 %v264_v31, %v263_v29  ;;  %v365_v35 = vpop.f32.mrb[4].mxu0  ;;  %v373_v36 = vpop.f32.mrb[4].mxu1 }
  0xea   :  { %v188_v38 = vadd.f32 %v365_v35, %v322_v12  ;;  %v179_v39 = vpop.f32.mrb[5].mxu0  ;;  %v220_v40 = vadd.f32 %v373_v36, %v322_v12  ;;  %v211_v41 = vpop.f32.mrb[5].mxu1 }
  0xeb   :  { %v280_v42 = vadd.f32 %v279_v34, %v265_v32  ;;  %v180_v43 = vadd.f32 %v322_v12, %v179_v39  ;;  %v244_v44 = vadd.f32 %v243_v33, %v175_v23  ;;  %v366_v45 = vpop.f32.mrb[6].mxu0  ;;  %v212_v46 = vadd.f32 %v322_v12, %v211_v41  ;;  %v374_v47 = vpop.f32.mrb[6].mxu1 }
  0xec   :  { %232 = vst [vmem:[%s529_s3 + $0x30] sm:$0xff] %v188_v38  ;;  %v191_v48 = vadd.f32 %v366_v45, %v322_v12  ;;  %v182_v49 = vpop.f32.mrb[7].mxu0  ;;  %240 = vst [vmem:[%s529_s3 + $0x70] sm:$0xff] %v220_v40  ;;  %v223_v50 = vadd.f32 %v374_v47, %v322_v12  ;;  %v214_v51 = vpop.f32.mrb[7].mxu1  ;;  %v269_v60 = vmul.f32 %v188_v38, %v188_v38 }
  0xed   :  { %230 = vst [vmem:[%s529_s3 + $0x20] sm:$0xff] %v180_v43  ;;  %v245_v52 = vadd.f32 %v244_v44, %v180_v43  ;;  %v267_v53 = vmul.f32 %v180_v43, %v180_v43  ;;  %v281_v54 = vadd.f32 %v280_v42, %v266_v37  ;;  %v183_v55 = vadd.f32 %v322_v12, %v182_v49 }
  0xee   :  { %238 = vst [vmem:[%s529_s3 + $0x60] sm:$0xff] %v212_v46  ;;  %233 = vst [vmem:[%s529_s3 + $0x38] sm:$0xff] %v191_v48  ;;  %v215_v56 = vadd.f32 %v322_v12, %v214_v51  ;;  %v270_v63 = vmul.f32 %v191_v48, %v191_v48  ;;  %v275_v14 = vmul.f32 %v212_v46, %v212_v46 }
  0xef   :  { %241 = vst [vmem:[%s529_s3 + $0x78] sm:$0xff] %v223_v50  ;;  %v282_v57 = vadd.f32 %v281_v54, %v267_v53  ;;  %231 = vst [vmem:[%s529_s3 + $0x28] sm:$0xff] %v183_v55  ;;  %v246_v58 = vadd.f32 %v245_v52, %v183_v55  ;;  %v268_v59 = vmul.f32 %v183_v55, %v183_v55 }
  0xf0   :  { %239 = vst [vmem:[%s529_s3 + $0x68] sm:$0xff] %v215_v56  ;;  %v276_v20 = vmul.f32 %v215_v56, %v215_v56  ;;  %v278_v24 = vmul.f32 %v223_v50, %v223_v50 }
  0xf1   :  { %v247_v61 = vadd.f32 %v246_v58, %v188_v38  ;;  %v283_v62 = vadd.f32 %v282_v57, %v268_v59 }
  0xf3   :  { %v284_v0 = vadd.f32 %v283_v62, %v269_v60  ;;  %v248_v1 = vadd.f32 %v247_v61, %v191_v48 }
  0xf5   :  { %v249_v3 = vadd.f32 %v248_v1, %v196_v21  ;;  %v285_v4 = vadd.f32 %v284_v0, %v270_v63  ;;  %v277_v21 = vmul.f32 %v220_v40, %v220_v40 }
  0xf7   :  { %v286_v5 = vadd.f32 %v285_v4, %v271_v2  ;;  %v250_v6 = vadd.f32 %v249_v3, %v199_v28 }
  0xf9   :  { %v251_v9 = vadd.f32 %v250_v6, %v463_v17  ;;  %v287_v10 = vadd.f32 %v286_v5, %v272_v7 }
  0xfb   :  { %v288_v12 = vadd.f32 %v287_v10, %v273_v8  ;;  %v252_v13 = vadd.f32 %v251_v9, %v472_v25 }
  0xfd   :  { %v253_v15 = vadd.f32 %v252_v13, %v212_v46  ;;  %v289_v16 = vadd.f32 %v288_v12, %v274_v11 }
  0xff   :  { %v290_v18 = vadd.f32 %v289_v16, %v275_v14  ;;  %v254_v19 = vadd.f32 %v253_v15, %v215_v56 }
 0x101   :  { %v255_v22 = vadd.f32 %v254_v19, %v220_v40  ;;  %v291_v23 = vadd.f32 %v290_v18, %v276_v20 }
 0x103   :  { %v256_v26 = vadd.f32 %v255_v22, %v223_v50  ;;  %v292_v27 = vadd.f32 %v291_v23, %v277_v21 }
 0x105   :  { %v257_v17 = vrot.slane %v256_v26, 4  ;;  %v293_v28 = vadd.f32 %v292_v27, %v278_v24 }
 0x107   :  { %v258_v29 = vadd.f32 %v257_v17, %v256_v26  ;;  %v294_v30 = vrot.slane %v293_v28, 4 }
 0x109   :  { %v259_v31 = vrot.slane %v258_v29, 2  ;;  %v295_v32 = vadd.f32 %v294_v30, %v293_v28 }
 0x10b   :  { %v260_v33 = vadd.f32 %v259_v31, %v258_v29  ;;  %v296_v25 = vrot.slane %v295_v32, 2 }
 0x10d   :  { %v261_v34 = vrot.slane %v260_v33, 1  ;;  %v297_v35 = vadd.f32 %v296_v25, %v295_v32 }
 0x10f   :  { %v298_v36 = vrot.slane %v297_v35, 1  ;;  %v262_v37 = vadd.f32 %v261_v34, %v260_v33 }
 0x111   :  { %v299_v38 = vadd.f32 %v298_v36, %v297_v35 }
 0x113   :  { %v301_v39 = vsel %vm300_vm2, %v262_v37, %v299_v38 }
 0x114   :  { %306 = vst [vmem:[%s530_s4] sm:$0x3] %v301_v39 }

// kernel: res_encoder_block.6
= control target key start
LH: loop header
LB: loop body
LE: loop exit
PB: predicated region body
PF: predicated region fallthrough
CT: control target
= control target key end

     0   :  { %vm430_vm0 = vcmask 1041408   ;;  %vm405_vm1 = vcmask 31744   ;;  %vm127_vm2 = vcmask 588800   ;;  %vm152_vm3 = vcmask 1043456   ;;  %s1038_s1 = inlined_call_operand.vmem [shape: bf16[72,128], index: 1, kind: input, shape index: {}]   ;;  %s1039_s4 = inlined_call_operand.vmem [shape: bf16[4,128], index: 4, kind: input, shape index: {}]   ;;  %s1040_s3 = inlined_call_operand.vmem [shape: bf16[128,4], index: 3, kind: input, shape index: {}]   ;;  %s1041_s0 = inlined_call_operand.vmem [shape: bf16[128,72], index: 0, kind: input, shape index: {}]   ;;  %s1042_s5 = inlined_call_operand.vmem [shape: f32[1,128], index: 5, kind: input, shape index: {}]   ;;  %s1043_s7 = inlined_call_operand.vmem [shape: f32[128,128], index: 7, kind: output, shape index: {1}]   ;;  %s1044_s2 = inlined_call_operand.vmem [shape: f32[1,128], index: 2, kind: input, shape index: {}]   ;;  %s1045_s6 = inlined_call_operand.vmem [shape: f32[128,128], index: 6, kind: output, shape index: {0}]   ;;  %s1046_s9 = inlined_call_operand.vmem [shape: f32[2,128], index: 9, kind: output, shape index: {3}]   ;;  %s1047_s8 = inlined_call_operand.vmem [shape: f32[2,128], index: 8, kind: output, shape index: {2}]  }
   0x1   :  { %v739_v0 = vld [vmem:[%s1038_s1] sm:$0xff]   ;;  %v740_v3 = vld [vmem:[%s1038_s1 + $0x8] sm:$0xff]   ;;  %v743_v6 = vld [vmem:[%s1038_s1 + $0x10] sm:$0xff]   ;;  %vm327_vm4 = vcmask 1040384  }
   0x2   :  { %v357_v1 = vld [vmem:[%s1039_s4] sm:$0x3]  ;;  %693 = vmatprep.subr.bf16.mxu0 %v739_v0  ;;  %v742_v5 = vld [vmem:[%s1040_s3 + $0x8] sm:$0xff]   ;;  %v745_v7 = vld [vmem:[%s1040_s3 + $0x10] sm:$0xff]  }
   0x3   :  { %738 = vmatprep.subr.msk.bf16.mxu1 %vm430_vm0, %v357_v1  ;;  %v432_v2 = vsel %vm430_vm0, %v357_v1, 0  ;;  %694 = vmatpush3.bf16.msra.mxu0 %v739_v0  ;;  %v741_v4 = vld [vmem:[%s1040_s3] sm:$0xff]   ;;  %v744_v8 = vld [vmem:[%s1038_s1 + $0x18] sm:$0xff]   ;;  %v749_v14 = vld [vmem:[%s1041_s0 + $0x8] sm:$0xff]  }
   0x4   :  { %720 = vmatpush3.bf16.msra.mxu1 %v432_v2  ;;  %695 = vmatprep.subr.bf16.mxu0 %v740_v3  ;;  %v748_v9 = vld [vmem:[%s1041_s0] sm:$0xff]   ;;  %v746_v10 = vld [vmem:[%s1040_s3 + $0x18] sm:$0xff]   ;;  %v751_v15 = vld [vmem:[%s1040_s3 + $0x28] sm:$0xff]  }
   0x5   :  { %721 = vmatprep.mubr.msk.bf16.mxu1 %vm405_vm1, %v741_v4  ;;  %703 = vmatprep.mubr.msk.bf16.mxu0 %vm127_vm2, %v748_v9  ;;  %v750_v11 = vld [vmem:[%s1040_s3 + $0x20] sm:$0xff]   ;;  %v752_v16 = vld [vmem:[%s1041_s0 + $0x10] sm:$0xff]   ;;  %v753_v18 = vld [vmem:[%s1041_s0 + $0x18] sm:$0xff]  }
   0x6   :  { %v747_v12 = vld [vmem:[%s1038_s1 + $0x20] ss:$0 sps:$4 sm:$0xff]   ;;  %v754_v17 = vld [vmem:[%s1040_s3 + $0x30] sm:$0xff]   ;;  %v755_v19 = vld [vmem:[%s1040_s3 + $0x38] sm:$0xff]  }
   0x7   :  { %722 = vmatmul.mubr.msk.bf16.vlgmr.msra.gmra.mrb[0].mxu1 %vm405_vm1, %v742_v5  ;;  %696 = vmatpush3.bf16.msra.mxu0 %v740_v3  ;;  %v154_v13 = vsel %vm152_vm3, %v747_v12, 0  ;;  %v756_v20 = vld [vmem:[%s1041_s0 + $0x20] sm:$0xff]   ;;  %v757_v21 = vld [vmem:[%s1041_s0 + $0x28] sm:$0xff]   ;;  %v758_v22 = vld [vmem:[%s1041_s0 + $0x30] sm:$0xff]  }
   0x8   :  { %697 = vmatprep.subr.bf16.mxu0 %v743_v6  ;;  %725 = vmatprep.mubr.msk.bf16.mxu1 %vm405_vm1, %v745_v7  ;;  %v759_v23 = vld [vmem:[%s1041_s0 + $0x38] sm:$0xff]   ;;  %v895_v24 = vld [vmem:[%s1042_s5] ss:$0 sm:$0xff] }
   0x9   :  { %v932_v57 = vld [vmem:[%s1044_s2] ss:$0 sm:$0xff] }
   0xb   :  { %698 = vmatpush3.bf16.msra.mxu0 %v743_v6 }
   0xc   :  { %699 = vmatprep.subr.bf16.mxu0 %v744_v8 }
   0xf   :  { %726 = vmatmul.mubr.msk.bf16.gmra.mrb[4].mxu1 %vm405_vm1, %v746_v10  ;;  %700 = vmatpush3.bf16.msra.mxu0 %v744_v8 }
  0x10   :  { %729 = vmatprep.mubr.msk.bf16.mxu1 %vm405_vm1, %v750_v11  ;;  %737 = vmatprep.subr.msk.bf16.mxu0 %vm152_vm3, %v747_v12 }
  0x13   :  { %702 = vmatpush3.bf16.msra.mxu0 %v154_v13 }
  0x16   :  { %704 = vmatmul.mubr.msk.bf16.vlgmr.msra.gmra.mrb[0].mxu0 %vm127_vm2, %v749_v14 }
  0x17   :  { %730 = vmatmul.mubr.msk.bf16.gmra.mrb[8].mxu1 %vm405_vm1, %v751_v15  ;;  %707 = vmatprep.mubr.msk.bf16.mxu0 %vm127_vm2, %v752_v16 }
  0x18   :  { %733 = vmatprep.mubr.msk.bf16.mxu1 %vm405_vm1, %v754_v17 }
  0x1e   :  { %708 = vmatmul.mubr.msk.bf16.gmra.mrb[4].mxu0 %vm127_vm2, %v753_v18 }
  0x1f   :  { %734 = vmatmul.mubr.msk.bf16.gmra.mrb[12].mxu1 %vm405_vm1, %v755_v19  ;;  %711 = vmatprep.mubr.msk.bf16.mxu0 %vm127_vm2, %v756_v20 }
  0x26   :  { %712 = vmatmul.mubr.msk.bf16.gmra.mrb[8].mxu0 %vm127_vm2, %v757_v21 }
  0x27   :  { %715 = vmatprep.mubr.msk.bf16.mxu0 %vm127_vm2, %v758_v22 }
  0x2e   :  { %716 = vmatmul.mubr.msk.bf16.gmra.mrb[12].mxu0 %vm127_vm2, %v759_v23 }
  0xda   :  { %v723_v25 = vpop.f32.mrb[0].mxu1 }
  0xdb   :  { %v477_v26 = vadd.f32 %v723_v25, %v895_v24  ;;  %v468_v27 = vpop.f32.mrb[1].mxu1 }
  0xdc   :  { %v469_v28 = vadd.f32 %v895_v24, %v468_v27  ;;  %v724_v29 = vpop.f32.mrb[2].mxu1 }
  0xdd   :  { %533 = vst [vmem:[%s1043_s7 + $0x10] sm:$0xff] %v477_v26  ;;  %v480_v30 = vadd.f32 %v724_v29, %v895_v24  ;;  %v471_v31 = vpop.f32.mrb[3].mxu1  ;;  %v570_v34 = vmul.f32 %v477_v26, %v477_v26 }
  0xde   :  { %531 = vst [vmem:[%s1043_s7] sm:$0xff] %v469_v28  ;;  %v568_v32 = vmul.f32 %v469_v28, %v469_v28  ;;  %v472_v33 = vadd.f32 %v895_v24, %v471_v31 }
  0xdf   :  { %534 = vst [vmem:[%s1043_s7 + $0x18] sm:$0xff] %v480_v30  ;;  %v571_v37 = vmul.f32 %v480_v30, %v480_v30 }
  0xe0   :  { %532 = vst [vmem:[%s1043_s7 + $0x8] sm:$0xff] %v472_v33  ;;  %v547_v35 = vadd.f32 %v472_v33, %v469_v28  ;;  %v569_v36 = vmul.f32 %v472_v33, %v472_v33 }
  0xe2   :  { %v548_v38 = vadd.f32 %v547_v35, %v477_v26  ;;  %v584_v39 = vadd.f32 %v569_v36, %v568_v32  ;;  %v727_v40 = vpop.f32.mrb[4].mxu1 }
  0xe3   :  { %v493_v41 = vadd.f32 %v727_v40, %v895_v24  ;;  %v484_v42 = vpop.f32.mrb[5].mxu1 }
  0xe4   :  { %v585_v43 = vadd.f32 %v584_v39, %v570_v34  ;;  %v485_v44 = vadd.f32 %v895_v24, %v484_v42  ;;  %v549_v45 = vadd.f32 %v548_v38, %v480_v30  ;;  %v728_v46 = vpop.f32.mrb[6].mxu1 }
  0xe5   :  { %537 = vst [vmem:[%s1043_s7 + $0x30] sm:$0xff] %v493_v41  ;;  %v496_v47 = vadd.f32 %v728_v46, %v895_v24  ;;  %v487_v48 = vpop.f32.mrb[7].mxu1  ;;  %v574_v53 = vmul.f32 %v493_v41, %v493_v41 }
  0xe6   :  { %535 = vst [vmem:[%s1043_s7 + $0x20] sm:$0xff] %v485_v44  ;;  %v550_v49 = vadd.f32 %v549_v45, %v485_v44  ;;  %v572_v50 = vmul.f32 %v485_v44, %v485_v44  ;;  %v586_v51 = vadd.f32 %v585_v43, %v571_v37  ;;  %v488_v52 = vadd.f32 %v895_v24, %v487_v48 }
  0xe7   :  { %538 = vst [vmem:[%s1043_s7 + $0x38] sm:$0xff] %v496_v47  ;;  %v575_v58 = vmul.f32 %v496_v47, %v496_v47 }
  0xe8   :  { %v587_v54 = vadd.f32 %v586_v51, %v572_v50  ;;  %536 = vst [vmem:[%s1043_s7 + $0x28] sm:$0xff] %v488_v52  ;;  %v551_v55 = vadd.f32 %v550_v49, %v488_v52  ;;  %v573_v56 = vmul.f32 %v488_v52, %v488_v52 }
  0xe9   :  { %v705_v61 = vpop.f32.mrb[0].mxu0 }
  0xea   :  { %v552_v59 = vadd.f32 %v551_v55, %v493_v41  ;;  %v588_v60 = vadd.f32 %v587_v54, %v573_v56  ;;  %v731_v62 = vpop.f32.mrb[8].mxu1  ;;  %v199_v63 = vadd.f32 %v705_v61, %v932_v57  ;;  %v190_v0 = vpop.f32.mrb[1].mxu0 }
  0xeb   :  { %v509_v1 = vadd.f32 %v731_v62, %v895_v24  ;;  %v500_v2 = vpop.f32.mrb[9].mxu1  ;;  %v191_v4 = vadd.f32 %v932_v57, %v190_v0  ;;  %v706_v5 = vpop.f32.mrb[2].mxu0 }
  0xec   :  { %v589_v3 = vadd.f32 %v588_v60, %v574_v53  ;;  %v501_v6 = vadd.f32 %v895_v24, %v500_v2  ;;  %v553_v7 = vadd.f32 %v552_v59, %v496_v47  ;;  %v732_v8 = vpop.f32.mrb[10].mxu1  ;;  %255 = vst [vmem:[%s1045_s6 + $0x10] sm:$0xff] %v199_v63  ;;  %v202_v9 = vadd.f32 %v706_v5, %v932_v57  ;;  %v193_v10 = vpop.f32.mrb[3].mxu0 }
  0xed   :  { %541 = vst [vmem:[%s1043_s7 + $0x50] sm:$0xff] %v509_v1  ;;  %v512_v11 = vadd.f32 %v732_v8, %v895_v24  ;;  %v503_v12 = vpop.f32.mrb[11].mxu1  ;;  %253 = vst [vmem:[%s1045_s6] sm:$0xff] %v191_v4  ;;  %v194_v16 = vadd.f32 %v932_v57, %v193_v10  ;;  %v290_v18 = vmul.f32 %v191_v4, %v191_v4 }
  0xee   :  { %539 = vst [vmem:[%s1043_s7 + $0x40] sm:$0xff] %v501_v6  ;;  %v554_v13 = vadd.f32 %v553_v7, %v501_v6  ;;  %v576_v14 = vmul.f32 %v501_v6, %v501_v6  ;;  %v590_v15 = vadd.f32 %v589_v3, %v575_v58  ;;  %256 = vst [vmem:[%s1045_s6 + $0x18] sm:$0xff] %v202_v9 }
  0xef   :  { %542 = vst [vmem:[%s1043_s7 + $0x58] sm:$0xff] %v512_v11  ;;  %v504_v17 = vadd.f32 %v895_v24, %v503_v12  ;;  %v578_v19 = vmul.f32 %v509_v1, %v509_v1  ;;  %254 = vst [vmem:[%s1045_s6 + $0x8] sm:$0xff] %v194_v16  ;;  %v269_v21 = vadd.f32 %v194_v16, %v191_v4 }
  0xf0   :  { %v591_v20 = vadd.f32 %v590_v15, %v576_v14  ;;  %v291_v22 = vmul.f32 %v194_v16, %v194_v16  ;;  %v292_v26 = vmul.f32 %v199_v63, %v199_v63  ;;  %v293_v27 = vmul.f32 %v202_v9, %v202_v9 }
  0xf1   :  { %540 = vst [vmem:[%s1043_s7 + $0x48] sm:$0xff] %v504_v17  ;;  %v555_v23 = vadd.f32 %v554_v13, %v504_v17  ;;  %v577_v25 = vmul.f32 %v504_v17, %v504_v17  ;;  %v579_v28 = vmul.f32 %v512_v11, %v512_v11  ;;  %v709_v29 = vpop.f32.mrb[4].mxu0  ;;  %v270_v31 = vadd.f32 %v269_v21, %v199_v63 }
  0xf2   :  { %v735_v30 = vpop.f32.mrb[12].mxu1  ;;  %v306_v32 = vadd.f32 %v291_v22, %v290_v18  ;;  %v206_v35 = vpop.f32.mrb[5].mxu0  ;;  %v215_v37 = vadd.f32 %v709_v29, %v932_v57 }
  0xf3   :  { %v556_v33 = vadd.f32 %v555_v23, %v509_v1  ;;  %v592_v34 = vadd.f32 %v591_v20, %v577_v25  ;;  %v516_v36 = vpop.f32.mrb[13].mxu1  ;;  %v207_v38 = vadd.f32 %v932_v57, %v206_v35  ;;  %v525_v39 = vadd.f32 %v735_v30, %v895_v24  ;;  %v710_v40 = vpop.f32.mrb[6].mxu0 }
  0xf4   :  { %v517_v41 = vadd.f32 %v895_v24, %v516_v36  ;;  %v736_v42 = vpop.f32.mrb[14].mxu1  ;;  %v307_v43 = vadd.f32 %v306_v32, %v292_v26  ;;  %v271_v45 = vadd.f32 %v270_v31, %v202_v9  ;;  %v218_v46 = vadd.f32 %v710_v40, %v932_v57  ;;  %v209_v47 = vpop.f32.mrb[7].mxu0  ;;  %259 = vst [vmem:[%s1045_s6 + $0x30] sm:$0xff] %v215_v37 }
  0xf5   :  { %v593_v44 = vadd.f32 %v592_v34, %v578_v19  ;;  %v519_v48 = vpop.f32.mrb[15].mxu1  ;;  %257 = vst [vmem:[%s1045_s6 + $0x20] sm:$0xff] %v207_v38  ;;  %v294_v49 = vmul.f32 %v207_v38, %v207_v38  ;;  %545 = vst [vmem:[%s1043_s7 + $0x70] sm:$0xff] %v525_v39  ;;  %v557_v50 = vadd.f32 %v556_v33, %v512_v11 }
  0xf6   :  { %543 = vst [vmem:[%s1043_s7 + $0x60] sm:$0xff] %v517_v41  ;;  %v272_v51 = vadd.f32 %v271_v45, %v207_v38  ;;  %v308_v52 = vadd.f32 %v307_v43, %v293_v27  ;;  %260 = vst [vmem:[%s1045_s6 + $0x38] sm:$0xff] %v218_v46  ;;  %v580_v53 = vmul.f32 %v517_v41, %v517_v41 }
  0xf7   :  { %v558_v54 = vadd.f32 %v557_v50, %v517_v41  ;;  %v594_v55 = vadd.f32 %v593_v44, %v579_v28  ;;  %v210_v56 = vadd.f32 %v932_v57, %v209_v47  ;;  %v528_v58 = vadd.f32 %v736_v42, %v895_v24 }
  0xf8   :  { %v309_v59 = vadd.f32 %v308_v52, %v294_v49  ;;  %v520_v60 = vadd.f32 %v895_v24, %v519_v48  ;;  %v296_v61 = vmul.f32 %v215_v37, %v215_v37  ;;  %v582_v2 = vmul.f32 %v525_v39, %v525_v39 }
  0xf9   :  { %v595_v62 = vadd.f32 %v594_v55, %v580_v53  ;;  %258 = vst [vmem:[%s1045_s6 + $0x28] sm:$0xff] %v210_v56  ;;  %v273_v63 = vadd.f32 %v272_v51, %v210_v56  ;;  %v295_v0 = vmul.f32 %v210_v56, %v210_v56  ;;  %546 = vst [vmem:[%s1043_s7 + $0x78] sm:$0xff] %v528_v58  ;;  %v713_v1 = vpop.f32.mrb[8].mxu0 }
  0xfa   :  { %544 = vst [vmem:[%s1043_s7 + $0x68] sm:$0xff] %v520_v60  ;;  %v559_v3 = vadd.f32 %v558_v54, %v520_v60  ;;  %v581_v24 = vmul.f32 %v520_v60, %v520_v60  ;;  %v231_v4 = vadd.f32 %v713_v1, %v932_v57  ;;  %v222_v5 = vpop.f32.mrb[9].mxu0  ;;  %v297_v6 = vmul.f32 %v218_v46, %v218_v46 }
  0xfb   :  { %v274_v7 = vadd.f32 %v273_v63, %v215_v37  ;;  %v310_v8 = vadd.f32 %v309_v59, %v295_v0  ;;  %v223_v9 = vadd.f32 %v932_v57, %v222_v5  ;;  %v714_v10 = vpop.f32.mrb[10].mxu0  ;;  %v583_v11 = vmul.f32 %v528_v58, %v528_v58 }
  0xfc   :  { %v560_v12 = vadd.f32 %v559_v3, %v525_v39  ;;  %v596_v13 = vadd.f32 %v595_v62, %v581_v24  ;;  %263 = vst [vmem:[%s1045_s6 + $0x50] sm:$0xff] %v231_v4  ;;  %v234_v14 = vadd.f32 %v714_v10, %v932_v57  ;;  %v225_v15 = vpop.f32.mrb[11].mxu0  ;;  %v300_v35 = vmul.f32 %v231_v4, %v231_v4 }
  0xfd   :  { %v311_v16 = vadd.f32 %v310_v8, %v296_v61  ;;  %261 = vst [vmem:[%s1045_s6 + $0x40] sm:$0xff] %v223_v9  ;;  %v275_v17 = vadd.f32 %v274_v7, %v218_v46  ;;  %v298_v18 = vmul.f32 %v223_v9, %v223_v9  ;;  %v226_v19 = vadd.f32 %v932_v57, %v225_v15 }
  0xfe   :  { %v561_v20 = vadd.f32 %v560_v12, %v528_v58  ;;  %v597_v21 = vadd.f32 %v596_v13, %v582_v2  ;;  %264 = vst [vmem:[%s1045_s6 + $0x58] sm:$0xff] %v234_v14  ;;  %v301_v42 = vmul.f32 %v234_v14, %v234_v14 }
  0xff   :  { %v276_v22 = vadd.f32 %v275_v17, %v223_v9  ;;  %v312_v23 = vadd.f32 %v311_v16, %v297_v6  ;;  %262 = vst [vmem:[%s1045_s6 + $0x48] sm:$0xff] %v226_v19  ;;  %v299_v25 = vmul.f32 %v226_v19, %v226_v19 }
 0x100   :  { %v562_v26 = vrot.slane %v561_v20, 4  ;;  %v598_v27 = vadd.f32 %v597_v21, %v583_v11 }
 0x101   :  { %v313_v28 = vadd.f32 %v312_v23, %v298_v18  ;;  %v277_v29 = vadd.f32 %v276_v22, %v226_v19  ;;  %v717_v30 = vpop.f32.mrb[12].mxu0 }
 0x102   :  { %v563_v31 = vadd.f32 %v562_v26, %v561_v20  ;;  %v599_v32 = vrot.slane %v598_v27, 4  ;;  %v247_v33 = vadd.f32 %v717_v30, %v932_v57  ;;  %v238_v34 = vpop.f32.mrb[13].mxu0 }
 0x103   :  { %v278_v36 = vadd.f32 %v277_v29, %v231_v4  ;;  %v314_v37 = vadd.f32 %v313_v28, %v299_v25  ;;  %v239_v38 = vadd.f32 %v932_v57, %v238_v34  ;;  %v718_v39 = vpop.f32.mrb[14].mxu0 }
 0x104   :  { %v564_v40 = vrot.slane %v563_v31, 2  ;;  %v600_v41 = vadd.f32 %v599_v32, %v598_v27  ;;  %267 = vst [vmem:[%s1045_s6 + $0x70] sm:$0xff] %v247_v33  ;;  %v250_v43 = vadd.f32 %v718_v39, %v932_v57  ;;  %v241_v44 = vpop.f32.mrb[15].mxu0 }
 0x105   :  { %v315_v45 = vadd.f32 %v314_v37, %v300_v35  ;;  %265 = vst [vmem:[%s1045_s6 + $0x60] sm:$0xff] %v239_v38  ;;  %v279_v46 = vadd.f32 %v278_v36, %v234_v14  ;;  %v302_v47 = vmul.f32 %v239_v38, %v239_v38  ;;  %v242_v48 = vadd.f32 %v932_v57, %v241_v44 }
 0x106   :  { %v565_v49 = vadd.f32 %v564_v40, %v563_v31  ;;  %v601_v50 = vrot.slane %v600_v41, 2  ;;  %268 = vst [vmem:[%s1045_s6 + $0x78] sm:$0xff] %v250_v43  ;;  %v304_v57 = vmul.f32 %v247_v33, %v247_v33  ;;  %v305_v0 = vmul.f32 %v250_v43, %v250_v43 }
 0x107   :  { %v280_v51 = vadd.f32 %v279_v46, %v239_v38  ;;  %v316_v52 = vadd.f32 %v315_v45, %v301_v42  ;;  %266 = vst [vmem:[%s1045_s6 + $0x68] sm:$0xff] %v242_v48  ;;  %v303_v53 = vmul.f32 %v242_v48, %v242_v48 }
 0x108   :  { %v566_v54 = vrot.slane %v565_v49, 1  ;;  %v602_v55 = vadd.f32 %v601_v50, %v600_v41 }
 0x109   :  { %v317_v56 = vadd.f32 %v316_v52, %v302_v47  ;;  %v281_v58 = vadd.f32 %v280_v51, %v242_v48 }
 0x10a   :  { %v567_v59 = vadd.f32 %v566_v54, %v565_v49  ;;  %v603_v60 = vrot.slane %v602_v55, 1 }
 0x10b   :  { %v282_v61 = vadd.f32 %v281_v58, %v247_v33  ;;  %v318_v62 = vadd.f32 %v317_v56, %v303_v53 }
 0x10c   :  { %v604_v63 = vadd.f32 %v603_v60, %v602_v55 }
 0x10d   :  { %v283_v1 = vadd.f32 %v282_v61, %v250_v43  ;;  %v319_v2 = vadd.f32 %v318_v62, %v304_v57 }
 0x10e   :  { %v605_v3 = vsel %vm327_vm4, %v567_v59, %v604_v63 }
 0x10f   :  { %609 = vst [vmem:[%s1046_s9] sm:$0x3] %v605_v3  ;;  %v284_v24 = vrot.slane %v283_v1, 4  ;;  %v320_v4 = vadd.f32 %v319_v2, %v305_v0 }
 0x111   :  { %v285_v5 = vadd.f32 %v284_v24, %v283_v1  ;;  %v321_v6 = vrot.slane %v320_v4, 4 }
 0x113   :  { %v286_v7 = vrot.slane %v285_v5, 2  ;;  %v322_v8 = vadd.f32 %v321_v6, %v320_v4 }
 0x115   :  { %v287_v9 = vadd.f32 %v286_v7, %v285_v5  ;;  %v323_v10 = vrot.slane %v322_v8, 2 }
 0x117   :  { %v288_v11 = vrot.slane %v287_v9, 1  ;;  %v324_v12 = vadd.f32 %v323_v10, %v322_v8 }
 0x119   :  { %v325_v13 = vrot.slane %v324_v12, 1  ;;  %v289_v14 = vadd.f32 %v288_v11, %v287_v9 }
 0x11b   :  { %v326_v15 = vadd.f32 %v325_v13, %v324_v12 }
 0x11d   :  { %v328_v16 = vsel %vm327_vm4, %v289_v14, %v326_v15 }
 0x11e   :  { %333 = vst [vmem:[%s1047_s8] sm:$0x3] %v328_v16 }

// kernel: res_encoder_block.7
= control target key start
LH: loop header
LB: loop body
LE: loop exit
PB: predicated region body
PF: predicated region fallthrough
CT: control target
= control target key end

     0   :  { %s466_s0 = inlined_call_operand.vmem [shape: f32[128,128], index: 0, kind: input, shape index: {}]   ;;  %s467_s1 = inlined_call_operand.vmem [shape: f32[1,128], index: 1, kind: input, shape index: {}]   ;;  %s468_s2 = inlined_call_operand.vmem [shape: f32[1,128], index: 2, kind: input, shape index: {}]   ;;  %s469_s3 = inlined_call_operand.vmem [shape: f32[128,128], index: 3, kind: input, shape index: {}]   ;;  %s470_s4 = inlined_call_operand.vmem [shape: f32[1,128], index: 4, kind: input, shape index: {}]   ;;  %s471_s5 = inlined_call_operand.vmem [shape: f32[1,128], index: 5, kind: input, shape index: {}]   ;;  %s472_s6 = inlined_call_operand.vmem [shape: f32[128,128], index: 6, kind: output, shape index: {}]  }
   0x1   :  { %v23_v0 = vld [vmem:[%s466_s0] sm:$0xff]  ;;  %v24_v8 = vld [vmem:[%s466_s0 + $0x8] sm:$0xff]  ;;  %v25_v10 = vld [vmem:[%s466_s0 + $0x10] sm:$0xff] }
   0x2   :  { %v244_v1 = vld [vmem:[%s467_s1] ss:$0 sm:$0xff]  ;;  %v86_v9 = vld [vmem:[%s469_s3 + $0x8] sm:$0xff]  ;;  %v87_v15 = vld [vmem:[%s469_s3 + $0x10] sm:$0xff] }
   0x3   :  { %v249_v2 = vld [vmem:[%s468_s2] ss:$0 sm:$0xff]  ;;  %v46_v3 = vmul.f32 %v244_v1, %v23_v0  ;;  %v47_v12 = vmul.f32 %v244_v1, %v24_v8  ;;  %v48_v14 = vmul.f32 %v244_v1, %v25_v10  ;;  %v26_v16 = vld [vmem:[%s466_s0 + $0x18] sm:$0xff]  ;;  %v28_v23 = vld [vmem:[%s466_s0 + $0x28] sm:$0xff] }
   0x4   :  { %v85_v4 = vld [vmem:[%s469_s3] sm:$0xff]  ;;  %v88_v17 = vld [vmem:[%s469_s3 + $0x18] sm:$0xff]  ;;  %v49_v19 = vmul.f32 %v244_v1, %v26_v16  ;;  %v90_v28 = vld [vmem:[%s469_s3 + $0x28] sm:$0xff]  ;;  %v51_v33 = vmul.f32 %v244_v1, %v28_v23 }
   0x5   :  { %v258_v5 = vld [vmem:[%s470_s4] ss:$0 sm:$0xff]  ;;  %v69_v11 = vadd.f32 %v249_v2, %v46_v3  ;;  %v70_v25 = vadd.f32 %v249_v2, %v47_v12  ;;  %v71_v26 = vadd.f32 %v249_v2, %v48_v14  ;;  %v29_v29 = vld [vmem:[%s466_s0 + $0x30] sm:$0xff]  ;;  %v30_v39 = vld [vmem:[%s466_s0 + $0x38] sm:$0xff] }
   0x6   :  { %v108_v6 = vmul.f32 %v258_v5, %v85_v4  ;;  %v264_v7 = vld [vmem:[%s471_s5] ss:$0 sm:$0xff]  ;;  %v109_v13 = vmul.f32 %v258_v5, %v86_v9  ;;  %v110_v18 = vmul.f32 %v258_v5, %v87_v15  ;;  %v111_v20 = vmul.f32 %v258_v5, %v88_v17  ;;  %v91_v30 = vld [vmem:[%s469_s3 + $0x30] sm:$0xff]  ;;  %v92_v44 = vld [vmem:[%s469_s3 + $0x38] sm:$0xff] }
   0x7   :  { %v27_v21 = vld [vmem:[%s466_s0 + $0x20] sm:$0xff]  ;;  %v72_v31 = vadd.f32 %v249_v2, %v49_v19  ;;  %v113_v34 = vmul.f32 %v258_v5, %v90_v28  ;;  %v74_v41 = vadd.f32 %v249_v2, %v51_v33  ;;  %v52_v42 = vmul.f32 %v244_v1, %v29_v29  ;;  %v32_v55 = vld [vmem:[%s466_s0 + $0x48] sm:$0xff]  ;;  %v33_v3 = vld [vmem:[%s466_s0 + $0x50] sm:$0xff] }
   0x8   :  { %v89_v22 = vld [vmem:[%s469_s3 + $0x20] sm:$0xff]  ;;  %v124_v24 = vadd.f32 %v108_v6, %v69_v11  ;;  %v50_v27 = vmul.f32 %v244_v1, %v27_v21  ;;  %v125_v36 = vadd.f32 %v109_v13, %v70_v25  ;;  %v126_v37 = vadd.f32 %v110_v18, %v71_v26  ;;  %v94_v60 = vld [vmem:[%s469_s3 + $0x48] sm:$0xff]  ;;  %v95_v4 = vld [vmem:[%s469_s3 + $0x50] sm:$0xff] }
   0x9   :  { %v112_v32 = vmul.f32 %v258_v5, %v89_v22  ;;  %v127_v40 = vadd.f32 %v111_v20, %v72_v31  ;;  %v114_v43 = vmul.f32 %v258_v5, %v91_v30  ;;  %v129_v50 = vadd.f32 %v113_v34, %v74_v41  ;;  %v31_v53 = vld [vmem:[%s466_s0 + $0x40] sm:$0xff]  ;;  %v34_v11 = vld [vmem:[%s466_s0 + $0x58] sm:$0xff]  ;;  %v36_v23 = vld [vmem:[%s466_s0 + $0x68] sm:$0xff] }
   0xa   :  { %v147_v35 = vadd.f32 %v264_v7, %v124_v24  ;;  %v73_v38 = vadd.f32 %v249_v2, %v50_v27  ;;  %v148_v46 = vadd.f32 %v264_v7, %v125_v36  ;;  %v149_v47 = vadd.f32 %v264_v7, %v126_v37  ;;  %v93_v54 = vld [vmem:[%s469_s3 + $0x40] sm:$0xff]  ;;  %v96_v12 = vld [vmem:[%s469_s3 + $0x58] sm:$0xff]  ;;  %v37_v33 = vld [vmem:[%s466_s0 + $0x70] sm:$0xff] }
   0xb   :  { %v150_v49 = vadd.f32 %v264_v7, %v127_v40  ;;  %v75_v51 = vadd.f32 %v249_v2, %v52_v42  ;;  %v53_v52 = vmul.f32 %v244_v1, %v30_v39  ;;  %v115_v59 = vmul.f32 %v258_v5, %v92_v44  ;;  %v35_v17 = vld [vmem:[%s466_s0 + $0x60] sm:$0xff]  ;;  %v99_v42 = vld [vmem:[%s469_s3 + $0x70] sm:$0xff] }
   0xc   :  { %v163_v45 = vmax.f32 %v147_v35, 0.0  ;;  %v128_v48 = vadd.f32 %v112_v32, %v73_v38  ;;  %v164_v56 = vmax.f32 %v148_v46, 0.0  ;;  %v165_v57 = vmax.f32 %v149_v47, 0.0  ;;  %v97_v22 = vld [vmem:[%s469_s3 + $0x60] sm:$0xff]  ;;  %v98_v32 = vld [vmem:[%s469_s3 + $0x68] sm:$0xff]  ;;  %v38_v47 = vld [vmem:[%s466_s0 + $0x78] sm:$0xff] }
   0xd   :  { %v166_v61 = vmax.f32 %v150_v49, 0.0  ;;  %v152_v62 = vadd.f32 %v264_v7, %v129_v50  ;;  %v130_v63 = vadd.f32 %v114_v43, %v75_v51  ;;  %v76_v0 = vadd.f32 %v249_v2, %v53_v52 }
   0xe   :  { %179 = vst [vmem:[%s472_s6] sm:$0xff] %v163_v45  ;;  %v151_v58 = vadd.f32 %v264_v7, %v128_v48  ;;  %180 = vst [vmem:[%s472_s6 + $0x8] sm:$0xff] %v164_v56  ;;  %v54_v8 = vmul.f32 %v244_v1, %v31_v53  ;;  %v116_v9 = vmul.f32 %v258_v5, %v93_v54  ;;  %v100_v48 = vld [vmem:[%s469_s3 + $0x78] sm:$0xff] }
   0xf   :  { %181 = vst [vmem:[%s472_s6 + $0x10] sm:$0xff] %v165_v57  ;;  %v55_v10 = vmul.f32 %v244_v1, %v32_v55  ;;  %182 = vst [vmem:[%s472_s6 + $0x18] sm:$0xff] %v166_v61  ;;  %v168_v13 = vmax.f32 %v152_v62, 0.0  ;;  %v153_v14 = vadd.f32 %v264_v7, %v130_v63  ;;  %v131_v15 = vadd.f32 %v115_v59, %v76_v0 }
  0x10   :  { %v167_v6 = vmax.f32 %v151_v58, 0.0  ;;  %v117_v16 = vmul.f32 %v258_v5, %v94_v60  ;;  %v77_v18 = vadd.f32 %v249_v2, %v54_v8  ;;  %v56_v20 = vmul.f32 %v244_v1, %v33_v3 }
  0x11   :  { %v78_v19 = vadd.f32 %v249_v2, %v55_v10  ;;  %v118_v21 = vmul.f32 %v258_v5, %v95_v4  ;;  %184 = vst [vmem:[%s472_s6 + $0x28] sm:$0xff] %v168_v13  ;;  %v169_v24 = vmax.f32 %v153_v14, 0.0  ;;  %v154_v25 = vadd.f32 %v264_v7, %v131_v15 }
  0x12   :  { %183 = vst [vmem:[%s472_s6 + $0x20] sm:$0xff] %v167_v6  ;;  %v57_v26 = vmul.f32 %v244_v1, %v34_v11  ;;  %v119_v27 = vmul.f32 %v258_v5, %v96_v12  ;;  %v132_v28 = vadd.f32 %v116_v9, %v77_v18  ;;  %v79_v30 = vadd.f32 %v249_v2, %v56_v20 }
  0x13   :  { %v133_v29 = vadd.f32 %v117_v16, %v78_v19  ;;  %v58_v31 = vmul.f32 %v244_v1, %v35_v17  ;;  %185 = vst [vmem:[%s472_s6 + $0x30] sm:$0xff] %v169_v24  ;;  %v170_v34 = vmax.f32 %v154_v25, 0.0  ;;  %v120_v36 = vmul.f32 %v258_v5, %v97_v22 }
  0x14   :  { %v80_v35 = vadd.f32 %v249_v2, %v57_v26  ;;  %v59_v37 = vmul.f32 %v244_v1, %v36_v23  ;;  %v155_v38 = vadd.f32 %v264_v7, %v132_v28  ;;  %v134_v40 = vadd.f32 %v118_v21, %v79_v30 }
  0x15   :  { %v156_v39 = vadd.f32 %v264_v7, %v133_v29  ;;  %v81_v41 = vadd.f32 %v249_v2, %v58_v31  ;;  %186 = vst [vmem:[%s472_s6 + $0x38] sm:$0xff] %v170_v34  ;;  %v121_v45 = vmul.f32 %v258_v5, %v98_v32  ;;  %v60_v46 = vmul.f32 %v244_v1, %v37_v33 }
  0x16   :  { %v135_v43 = vadd.f32 %v119_v27, %v80_v35  ;;  %v82_v44 = vadd.f32 %v249_v2, %v59_v37  ;;  %v171_v49 = vmax.f32 %v155_v38, 0.0  ;;  %v157_v51 = vadd.f32 %v264_v7, %v134_v40 }
  0x17   :  { %v172_v50 = vmax.f32 %v156_v39, 0.0  ;;  %v136_v52 = vadd.f32 %v120_v36, %v81_v41  ;;  %v83_v55 = vadd.f32 %v249_v2, %v60_v46  ;;  %v122_v56 = vmul.f32 %v258_v5, %v99_v42 }
  0x18   :  { %v158_v53 = vadd.f32 %v264_v7, %v135_v43  ;;  %v137_v54 = vadd.f32 %v121_v45, %v82_v44  ;;  %187 = vst [vmem:[%s472_s6 + $0x40] sm:$0xff] %v171_v49  ;;  %v173_v57 = vmax.f32 %v157_v51, 0.0  ;;  %v61_v59 = vmul.f32 %v244_v1, %v38_v47 }
  0x19   :  { %188 = vst [vmem:[%s472_s6 + $0x48] sm:$0xff] %v172_v50  ;;  %v159_v58 = vadd.f32 %v264_v7, %v136_v52  ;;  %v123_v60 = vmul.f32 %v258_v5, %v100_v48  ;;  %v138_v63 = vadd.f32 %v122_v56, %v83_v55 }
  0x1a   :  { %v174_v61 = vmax.f32 %v158_v53, 0.0  ;;  %v160_v62 = vadd.f32 %v264_v7, %v137_v54  ;;  %189 = vst [vmem:[%s472_s6 + $0x50] sm:$0xff] %v173_v57  ;;  %v84_v3 = vadd.f32 %v249_v2, %v61_v59 }
  0x1b   :  { %v175_v0 = vmax.f32 %v159_v58, 0.0  ;;  %v161_v1 = vadd.f32 %v264_v7, %v138_v63 }
  0x1c   :  { %190 = vst [vmem:[%s472_s6 + $0x58] sm:$0xff] %v174_v61  ;;  %v176_v4 = vmax.f32 %v160_v62, 0.0  ;;  %v139_v5 = vadd.f32 %v123_v60, %v84_v3 }
  0x1d   :  { %191 = vst [vmem:[%s472_s6 + $0x60] sm:$0xff] %v175_v0  ;;  %v177_v6 = vmax.f32 %v161_v1, 0.0 }
  0x1e   :  { %192 = vst [vmem:[%s472_s6 + $0x68] sm:$0xff] %v176_v4  ;;  %v162_v8 = vadd.f32 %v264_v7, %v139_v5 }
  0x1f   :  { %193 = vst [vmem:[%s472_s6 + $0x70] sm:$0xff] %v177_v6 }
  0x20   :  { %v178_v2 = vmax.f32 %v162_v8, 0.0 }
  0x22   :  { %194 = vst [vmem:[%s472_s6 + $0x78] sm:$0xff] %v178_v2 }

</bundles_post_ra>
